<compile_context>
chip_gen: v7x
topology: tpu7x:2x2x1
jax: 0.10.0
libtpu: 0.0.40
codegen_flags: <defaults>
</compile_context>

<pallas_src>
import functools

import jax
import jax.numpy as jnp
from jax.experimental import pallas as pl
from jax.experimental.pallas import tpu as pltpu

EPS = 1e-5
NEG_SLOPE = 0.01      # nn.LeakyReLU default
NUM_LAYERS = 4
LANE = 128


def _round_up(n, m=LANE):
    return ((n + m - 1) // m) * m


def text_encoder_kernel(x_ref, gb_ref, w1_ref, w2_ref, w3_ref, w4_ref, o_ref,
                        *, n_tok):
    """Single invocation: full (B*K, C_in) slab -> (B*K, H_out) slab.

    Row i of the slab is (batch b = i // K, token k = i % K).
    """
    f32 = jnp.float32
    n_rows = x_ref.shape[0]                 # B*K
    n_batch = n_rows // n_tok               # B
    inv_b = 1.0 / float(n_batch)

    # One-hot token-group masks, built in-kernel (no HBM input / extra DMA).
    row_tok = jax.lax.broadcasted_iota(jnp.int32, (n_rows, n_tok), 0) % n_tok
    tok_col = jax.lax.broadcasted_iota(jnp.int32, (n_rows, n_tok), 1)
    masks = (row_tok == tok_col).astype(f32)                    # (B*K, K)
    tok_row = jax.lax.broadcasted_iota(jnp.int32, (n_tok, n_rows), 0)
    row_tok_t = jax.lax.broadcasted_iota(jnp.int32, (n_tok, n_rows), 1) % n_tok
    masks_t = (row_tok_t == tok_row).astype(f32)                # (K, B*K)

    gb = gb_ref[...]                                            # (2L, H_max) f32
    w_refs = (w1_ref, w2_ref, w3_ref, w4_ref)
    hp = jax.lax.Precision.HIGHEST

    h = x_ref[...]                                              # bf16 (B*K, C_in)
    for l in range(NUM_LAYERS):
        w = w_refs[l][...]                                      # bf16 (C_l, H_l)
        h_l = w.shape[1]

        # Linear on the MXU: bf16 operands, f32 accumulation.  (The nn.Linear
        # bias is omitted: train-mode BN subtracts the batch mean right after,
        # so a per-feature bias cancels exactly.)
        y = jnp.dot(h, w, preferred_element_type=f32)           # (B*K, H_l) f32

        # BatchNorm1d (training-mode, biased batch stats) per token group,
        # computed as compact (K, H_l) stats with MXU matmuls instead of K
        # masked full-slab VPU/XLU reduction passes.
        sum_k = jnp.dot(masks_t, y, preferred_element_type=f32, precision=hp)
        sqsum_k = jnp.dot(masks_t, y * y, preferred_element_type=f32, precision=hp)
        mean_k = sum_k * inv_b                                  # (K, H_l)
        var_k = jnp.maximum(sqsum_k * inv_b - mean_k * mean_k, 0.0)

        gamma = gb[l:l + 1, 0:h_l]                              # (1, H_l)
        beta = gb[NUM_LAYERS + l:NUM_LAYERS + l + 1, 0:h_l]     # (1, H_l)
        # rsqrt + affine folded on the compact stats (EUP work / B, not * B).
        scale_k = gamma * jax.lax.rsqrt(var_k + EPS)            # (K, H_l)
        shift_k = beta - mean_k * scale_k                       # (K, H_l)

        # Broadcast compact stats back to rows with one-hot matmuls (MXU has
        # slack), then a single fused elementwise pass: scale, shift, LeakyReLU.
        scale = jnp.dot(masks, scale_k, preferred_element_type=f32, precision=hp)
        shift = jnp.dot(masks, shift_k, preferred_element_type=f32, precision=hp)
        y = y * scale + shift
        act = jnp.where(y >= 0, y, NEG_SLOPE * y)
        h = act.astype(jnp.bfloat16) if l < NUM_LAYERS - 1 else act

    o_ref[...] = h.astype(o_ref.dtype)


def text_encoder_pallas(x_bkc, params):
    """x_bkc: (B, K, C_in) float32.
    params: list of NUM_LAYERS (weight (C_l, H_l), gamma (1, H_l), beta (1, H_l)).
    Returns (B, K, H_last) float32 matching TextEncoder.forward (train-mode BN).
    """
    B, K, C_in = x_bkc.shape
    assert len(params) == NUM_LAYERS
    hidden = [w.shape[1] for (w, _, _) in params]
    h_out = hidden[-1]
    n_rows = B * K

    # Lane-pad every feature dim to a multiple of 128 so all activation /
    # weight tiles are lane-dense and the output store is unmasked.  Demo dims
    # are already aligned, so these pads are no-ops.
    c_pad = _round_up(C_in)
    h_pads = [_round_up(h) for h in hidden]
    h_max = max(h_pads)
    in_dims = [c_pad] + h_pads[:-1]

    # Free contiguous reshape: row i = (batch i // K, token i % K).  Cast to
    # bf16 once (halves the x DMA; MXU is bf16-native on v5e/v6e/v7x).
    x2d = x_bkc.reshape(n_rows, C_in)
    if c_pad != C_in:
        x2d = jnp.pad(x2d, ((0, 0), (0, c_pad - C_in)))
    x2d = x2d.astype(jnp.bfloat16)

    ws = []
    for l, (w, _, _) in enumerate(params):
        wp = jnp.pad(w, ((0, in_dims[l] - w.shape[0]), (0, h_pads[l] - w.shape[1])))
        ws.append(wp.astype(jnp.bfloat16))

    # Pack all gammas / betas into one (2L, H_max) f32 array (rows 0..L-1 are
    # gammas, rows L..2L-1 betas).  Zero padding keeps padded channels at 0.
    def _pad_row(v):
        v = v.reshape(1, -1).astype(jnp.float32)
        return jnp.pad(v, ((0, 0), (0, h_max - v.shape[1])))
    gb = jnp.concatenate([_pad_row(g) for (_, g, _) in params]
                         + [_pad_row(b) for (_, _, b) in params], axis=0)

    inputs = (x2d, gb, *ws)
    in_specs = [pl.BlockSpec(a.shape, lambda i: (0, 0)) for a in inputs]

    # VMEM budget: inputs + output (x2 for the pipeline's default double
    # buffering, even at grid=(1,)) + in-kernel f32 temporaries (~6 slabs of
    # headroom).  Capped at v7x's 64 MiB physical VMEM.
    out_bytes = n_rows * h_pads[-1] * 4
    in_bytes = sum(int(a.size) * a.dtype.itemsize for a in inputs)
    slab_bytes = n_rows * max([c_pad] + h_pads) * 4
    budget = 2 * (in_bytes + out_bytes) + 6 * slab_bytes + (2 << 20)
    vmem_limit = int(min(max(budget, 16 << 20), 64 << 20))

    kernel = functools.partial(text_encoder_kernel, n_tok=K)

    # TODO(synk): on v7x (2 TensorCores) a leading "parallel" grid axis splitting
    # the K token groups across cores would ~2x compute-bound sizes; a single
    # grid step is kept because per-step overhead dominates at these tiny sizes.
    out = pl.pallas_call(
        kernel,
        out_shape=jax.ShapeDtypeStruct((n_rows, h_pads[-1]), jnp.float32),
        grid_spec=pltpu.PrefetchScalarGridSpec(
            num_scalar_prefetch=0,
            grid=(1,),                                   # single step: workload is tiny
            in_specs=in_specs,
            out_specs=pl.BlockSpec((n_rows, h_pads[-1]), lambda i: (0, 0)),
        ),
        compiler_params=pltpu.CompilerParams(
            dimension_semantics=("arbitrary",),
            vmem_limit_bytes=vmem_limit),
    )(*inputs)

    # Free view / slice back to the PyTorch (B, K, H_out) convention.
    return out[:, :h_out].reshape(B, K, h_out)


def init_params(key, in_channels, hidden_dims):
    """(weight, gamma, beta) per layer.  The nn.Linear bias is intentionally
    omitted: with train-mode BatchNorm immediately after the Linear it cancels
    exactly, so the forward map is unchanged."""
    params = []
    dims = [in_channels] + list(hidden_dims)
    for i in range(NUM_LAYERS):
        key, kw, kg, kb = jax.random.split(key, 4)
        w = jax.random.normal(kw, (dims[i], dims[i + 1]), jnp.float32) / jnp.sqrt(dims[i])
        gamma = 1.0 + 0.1 * jax.random.normal(kg, (1, dims[i + 1]), jnp.float32)
        beta = 0.1 * jax.random.normal(kb, (1, dims[i + 1]), jnp.float32)
        params.append((w, gamma, beta))
    return params


def text_encoder_ref(x_bkc, params):
    """Pure-JAX f32 reference mirroring the PyTorch forward (train-mode BN)."""
    outs = []
    for k in range(x_bkc.shape[1]):
        h = x_bkc[:, k, :]
        for (w, g, be) in params:
            y = h @ w
            mean = jnp.mean(y, axis=0, keepdims=True)
            var = jnp.mean((y - mean) ** 2, axis=0, keepdims=True)
            y = (y - mean) / jnp.sqrt(var + EPS) * g + be
            h = jnp.where(y >= 0, y, NEG_SLOPE * y)
        outs.append(h[:, None, :])
    return jnp.concatenate(outs, axis=1)


if __name__ == "__main__":
    B, K, C_in = 8, 4, 128
    hidden_dims = [128, 128, 128, 128]       # lane-friendly demo dims

    key = jax.random.PRNGKey(0)
    kx, kp = jax.random.split(key)
    x = jax.random.normal(kx, (B, K, C_in), jnp.float32)
    params = init_params(kp, C_in, hidden_dims)

    out = jax.block_until_ready(text_encoder_pallas(x, params))
    ref = text_encoder_ref(x, params)

    assert out.shape == (B, K, hidden_dims[-1])
    # bf16 matmul operands (f32 accumulation) vs. a pure-f32 reference ->
    # tolerance loosened; BatchNorm renormalization keeps the drift small.
    max_err = float(jnp.max(jnp.abs(out - ref)))
    assert jnp.allclose(out, ref, atol=5e-2, rtol=5e-2), max_err

    print("KERNEL_OK")
</pallas_src>

<mosaic_0001>
module attributes {stable_mosaic.version = 11 : i64} {
  func.func @text_encoder_kernel(%arg0: i32, %arg1: memref<32x128xbf16, #tpu.memory_space<vmem>>, %arg2: memref<8x128xf32, #tpu.memory_space<vmem>>, %arg3: memref<128x128xbf16, #tpu.memory_space<vmem>>, %arg4: memref<128x128xbf16, #tpu.memory_space<vmem>>, %arg5: memref<128x128xbf16, #tpu.memory_space<vmem>>, %arg6: memref<128x128xbf16, #tpu.memory_space<vmem>>, %arg7: memref<32x128xf32, #tpu.memory_space<vmem>>) attributes {dimension_semantics = [#tpu.dimension_semantics<arbitrary>], iteration_bounds = array<i64: 1>, scalar_prefetch = 0 : i64, scratch_operands = 0 : i64, tpu.core_type = #tpu.core_type<tc>, window_params = [{pipeline_mode = #tpu.pipeline_mode<synchronous>, transform_indices = @transform_0, window_bounds = array<i64: 32, 128>}, {pipeline_mode = #tpu.pipeline_mode<synchronous>, transform_indices = @transform_1, window_bounds = array<i64: 8, 128>}, {pipeline_mode = #tpu.pipeline_mode<synchronous>, transform_indices = @transform_2, window_bounds = array<i64: 128, 128>}, {pipeline_mode = #tpu.pipeline_mode<synchronous>, transform_indices = @transform_3, window_bounds = array<i64: 128, 128>}, {pipeline_mode = #tpu.pipeline_mode<synchronous>, transform_indices = @transform_4, window_bounds = array<i64: 128, 128>}, {pipeline_mode = #tpu.pipeline_mode<synchronous>, transform_indices = @transform_5, window_bounds = array<i64: 128, 128>}, {pipeline_mode = #tpu.pipeline_mode<synchronous>, transform_indices = @transform_6, window_bounds = array<i64: 32, 128>}]} {
    %0 = tpu.iota {dimensions = array<i32: 0>} : vector<32x4xi32>
    %c4_i32 = arith.constant 4 : i32
    %c0_i32 = arith.constant 0 : i32
    %1 = arith.cmpi eq, %c4_i32, %c0_i32 : i32
    %c1_i32 = arith.constant 1 : i32
    %2 = arith.select %1, %c1_i32, %c4_i32 : i32
    %3 = vector.broadcast %2 : i32 to vector<32x4xi32>
    %4 = arith.remsi %0, %3 : vector<32x4xi32>
    %c0_i32_0 = arith.constant 0 : i32
    %5 = vector.broadcast %c0_i32_0 : i32 to vector<32x4xi32>
    %6 = arith.cmpi ne, %4, %5 : vector<32x4xi32>
    %c0_i32_1 = arith.constant 0 : i32
    %7 = vector.broadcast %c0_i32_1 : i32 to vector<32x4xi32>
    %8 = arith.cmpi slt, %4, %7 : vector<32x4xi32>
    %c0_i32_2 = arith.constant 0 : i32
    %9 = arith.cmpi slt, %2, %c0_i32_2 : i32
    %10 = vector.broadcast %9 : i1 to vector<32x4xi1>
    %11 = vector.broadcast %10 : vector<32x4xi1> to vector<32x4xi1>
    %12 = arith.xori %8, %11 : vector<32x4xi1>
    %13 = arith.andi %12, %6 : vector<32x4xi1>
    %14 = vector.broadcast %2 : i32 to vector<32x4xi32>
    %15 = arith.addi %4, %14 : vector<32x4xi32>
    %16 = arith.select %13, %15, %4 : vector<32x4xi1>, vector<32x4xi32>
    %17 = tpu.iota {dimensions = array<i32: 1>} : vector<32x4xi32>
    %18 = arith.cmpi eq, %16, %17 : vector<32x4xi32>
    %19 = arith.extui %18 : vector<32x4xi1> to vector<32x4xi32>
    %20 = arith.sitofp %19 : vector<32x4xi32> to vector<32x4xf32>
    %21 = tpu.iota {dimensions = array<i32: 0>} : vector<4x32xi32>
    %22 = tpu.iota {dimensions = array<i32: 1>} : vector<4x32xi32>
    %c4_i32_3 = arith.constant 4 : i32
    %c0_i32_4 = arith.constant 0 : i32
    %23 = arith.cmpi eq, %c4_i32_3, %c0_i32_4 : i32
    %c1_i32_5 = arith.constant 1 : i32
    %24 = arith.select %23, %c1_i32_5, %c4_i32_3 : i32
    %25 = vector.broadcast %24 : i32 to vector<4x32xi32>
    %26 = arith.remsi %22, %25 : vector<4x32xi32>
    %c0_i32_6 = arith.constant 0 : i32
    %27 = vector.broadcast %c0_i32_6 : i32 to vector<4x32xi32>
    %28 = arith.cmpi ne, %26, %27 : vector<4x32xi32>
    %c0_i32_7 = arith.constant 0 : i32
    %29 = vector.broadcast %c0_i32_7 : i32 to vector<4x32xi32>
    %30 = arith.cmpi slt, %26, %29 : vector<4x32xi32>
    %c0_i32_8 = arith.constant 0 : i32
    %31 = arith.cmpi slt, %24, %c0_i32_8 : i32
    %32 = vector.broadcast %31 : i1 to vector<4x32xi1>
    %33 = vector.broadcast %32 : vector<4x32xi1> to vector<4x32xi1>
    %34 = arith.xori %30, %33 : vector<4x32xi1>
    %35 = arith.andi %34, %28 : vector<4x32xi1>
    %36 = vector.broadcast %24 : i32 to vector<4x32xi32>
    %37 = arith.addi %26, %36 : vector<4x32xi32>
    %38 = arith.select %35, %37, %26 : vector<4x32xi1>, vector<4x32xi32>
    %39 = arith.cmpi eq, %38, %21 : vector<4x32xi32>
    %40 = arith.extui %39 : vector<4x32xi1> to vector<4x32xi32>
    %41 = arith.sitofp %40 : vector<4x32xi32> to vector<4x32xf32>
    %c0 = arith.constant 0 : index
    %c0_9 = arith.constant 0 : index
    %42 = vector.load %arg2[%c0, %c0_9] : memref<8x128xf32, #tpu.memory_space<vmem>>, vector<8x128xf32>
    %c0_10 = arith.constant 0 : index
    %c0_11 = arith.constant 0 : index
    %43 = vector.load %arg1[%c0_10, %c0_11] : memref<32x128xbf16, #tpu.memory_space<vmem>>, vector<32x128xbf16>
    %c0_12 = arith.constant 0 : index
    %c0_13 = arith.constant 0 : index
    %44 = vector.load %arg3[%c0_12, %c0_13] : memref<128x128xbf16, #tpu.memory_space<vmem>>, vector<128x128xbf16>
    %cst = arith.constant dense<0.000000e+00> : vector<32x128xf32>
    %45 = tpu.matmul %43, %44, %cst {dimension_numbers = #tpu.dot_dimension_numbers<[1], [0], [0], [1], [0, 0, 1, 1], [], []>} : vector<32x128xbf16>, vector<128x128xbf16>, vector<32x128xf32> -> vector<32x128xf32>
    %cst_14 = arith.constant dense<0.000000e+00> : vector<4x128xf32>
    %46 = tpu.matmul %41, %45, %cst_14 {dimension_numbers = #tpu.dot_dimension_numbers<[1], [0], [0], [1], [0, 0, 1, 1], [], []>, precision = #tpu.contract_precision<fp32>} : vector<4x32xf32>, vector<32x128xf32>, vector<4x128xf32> -> vector<4x128xf32>
    %47 = arith.mulf %45, %45 : vector<32x128xf32>
    %cst_15 = arith.constant dense<0.000000e+00> : vector<4x128xf32>
    %48 = tpu.matmul %41, %47, %cst_15 {dimension_numbers = #tpu.dot_dimension_numbers<[1], [0], [0], [1], [0, 0, 1, 1], [], []>, precision = #tpu.contract_precision<fp32>} : vector<4x32xf32>, vector<32x128xf32>, vector<4x128xf32> -> vector<4x128xf32>
    %cst_16 = arith.constant 1.250000e-01 : f32
    %49 = vector.broadcast %cst_16 : f32 to vector<4x128xf32>
    %50 = arith.mulf %46, %49 : vector<4x128xf32>
    %cst_17 = arith.constant 1.250000e-01 : f32
    %51 = vector.broadcast %cst_17 : f32 to vector<4x128xf32>
    %52 = arith.mulf %48, %51 : vector<4x128xf32>
    %53 = arith.mulf %50, %50 : vector<4x128xf32>
    %54 = arith.subf %52, %53 : vector<4x128xf32>
    %cst_18 = arith.constant 0.000000e+00 : f32
    %55 = vector.broadcast %cst_18 : f32 to vector<4x128xf32>
    %56 = arith.maximumf %54, %55 : vector<4x128xf32>
    %57 = vector.extract_strided_slice %42 {offsets = [0, 0], sizes = [1, 128], strides = [1, 1]} : vector<8x128xf32> to vector<1x128xf32>
    %58 = vector.extract_strided_slice %42 {offsets = [4, 0], sizes = [1, 128], strides = [1, 1]} : vector<8x128xf32> to vector<1x128xf32>
    %cst_19 = arith.constant 9.99999974E-6 : f32
    %59 = vector.broadcast %cst_19 : f32 to vector<4x128xf32>
    %60 = arith.addf %56, %59 : vector<4x128xf32>
    %61 = math.rsqrt %60 : vector<4x128xf32>
    %62 = vector.broadcast %57 : vector<1x128xf32> to vector<4x128xf32>
    %63 = arith.mulf %62, %61 : vector<4x128xf32>
    %64 = arith.mulf %50, %63 : vector<4x128xf32>
    %65 = vector.broadcast %58 : vector<1x128xf32> to vector<4x128xf32>
    %66 = arith.subf %65, %64 : vector<4x128xf32>
    %cst_20 = arith.constant dense<0.000000e+00> : vector<32x128xf32>
    %67 = tpu.matmul %20, %63, %cst_20 {dimension_numbers = #tpu.dot_dimension_numbers<[1], [0], [0], [1], [0, 0, 1, 1], [], []>, precision = #tpu.contract_precision<fp32>} : vector<32x4xf32>, vector<4x128xf32>, vector<32x128xf32> -> vector<32x128xf32>
    %cst_21 = arith.constant dense<0.000000e+00> : vector<32x128xf32>
    %68 = tpu.matmul %20, %66, %cst_21 {dimension_numbers = #tpu.dot_dimension_numbers<[1], [0], [0], [1], [0, 0, 1, 1], [], []>, precision = #tpu.contract_precision<fp32>} : vector<32x4xf32>, vector<4x128xf32>, vector<32x128xf32> -> vector<32x128xf32>
    %69 = arith.mulf %45, %67 : vector<32x128xf32>
    %70 = arith.addf %69, %68 : vector<32x128xf32>
    %cst_22 = arith.constant 0.000000e+00 : f32
    %71 = vector.broadcast %cst_22 : f32 to vector<32x128xf32>
    %72 = arith.cmpf oge, %70, %71 : vector<32x128xf32>
    %cst_23 = arith.constant 0.00999999977 : f32
    %73 = vector.broadcast %cst_23 : f32 to vector<32x128xf32>
    %74 = arith.mulf %73, %70 : vector<32x128xf32>
    %75 = arith.select %72, %70, %74 : vector<32x128xi1>, vector<32x128xf32>
    %76 = arith.truncf %75 : vector<32x128xf32> to vector<32x128xbf16>
    %c0_24 = arith.constant 0 : index
    %c0_25 = arith.constant 0 : index
    %77 = vector.load %arg4[%c0_24, %c0_25] : memref<128x128xbf16, #tpu.memory_space<vmem>>, vector<128x128xbf16>
    %cst_26 = arith.constant dense<0.000000e+00> : vector<32x128xf32>
    %78 = tpu.matmul %76, %77, %cst_26 {dimension_numbers = #tpu.dot_dimension_numbers<[1], [0], [0], [1], [0, 0, 1, 1], [], []>} : vector<32x128xbf16>, vector<128x128xbf16>, vector<32x128xf32> -> vector<32x128xf32>
    %cst_27 = arith.constant dense<0.000000e+00> : vector<4x128xf32>
    %79 = tpu.matmul %41, %78, %cst_27 {dimension_numbers = #tpu.dot_dimension_numbers<[1], [0], [0], [1], [0, 0, 1, 1], [], []>, precision = #tpu.contract_precision<fp32>} : vector<4x32xf32>, vector<32x128xf32>, vector<4x128xf32> -> vector<4x128xf32>
    %80 = arith.mulf %78, %78 : vector<32x128xf32>
    %cst_28 = arith.constant dense<0.000000e+00> : vector<4x128xf32>
    %81 = tpu.matmul %41, %80, %cst_28 {dimension_numbers = #tpu.dot_dimension_numbers<[1], [0], [0], [1], [0, 0, 1, 1], [], []>, precision = #tpu.contract_precision<fp32>} : vector<4x32xf32>, vector<32x128xf32>, vector<4x128xf32> -> vector<4x128xf32>
    %cst_29 = arith.constant 1.250000e-01 : f32
    %82 = vector.broadcast %cst_29 : f32 to vector<4x128xf32>
    %83 = arith.mulf %79, %82 : vector<4x128xf32>
    %cst_30 = arith.constant 1.250000e-01 : f32
    %84 = vector.broadcast %cst_30 : f32 to vector<4x128xf32>
    %85 = arith.mulf %81, %84 : vector<4x128xf32>
    %86 = arith.mulf %83, %83 : vector<4x128xf32>
    %87 = arith.subf %85, %86 : vector<4x128xf32>
    %cst_31 = arith.constant 0.000000e+00 : f32
    %88 = vector.broadcast %cst_31 : f32 to vector<4x128xf32>
    %89 = arith.maximumf %87, %88 : vector<4x128xf32>
    %90 = vector.extract_strided_slice %42 {offsets = [1, 0], sizes = [1, 128], strides = [1, 1]} : vector<8x128xf32> to vector<1x128xf32>
    %91 = vector.extract_strided_slice %42 {offsets = [5, 0], sizes = [1, 128], strides = [1, 1]} : vector<8x128xf32> to vector<1x128xf32>
    %cst_32 = arith.constant 9.99999974E-6 : f32
    %92 = vector.broadcast %cst_32 : f32 to vector<4x128xf32>
    %93 = arith.addf %89, %92 : vector<4x128xf32>
    %94 = math.rsqrt %93 : vector<4x128xf32>
    %95 = vector.broadcast %90 : vector<1x128xf32> to vector<4x128xf32>
    %96 = arith.mulf %95, %94 : vector<4x128xf32>
    %97 = arith.mulf %83, %96 : vector<4x128xf32>
    %98 = vector.broadcast %91 : vector<1x128xf32> to vector<4x128xf32>
    %99 = arith.subf %98, %97 : vector<4x128xf32>
    %cst_33 = arith.constant dense<0.000000e+00> : vector<32x128xf32>
    %100 = tpu.matmul %20, %96, %cst_33 {dimension_numbers = #tpu.dot_dimension_numbers<[1], [0], [0], [1], [0, 0, 1, 1], [], []>, precision = #tpu.contract_precision<fp32>} : vector<32x4xf32>, vector<4x128xf32>, vector<32x128xf32> -> vector<32x128xf32>
    %cst_34 = arith.constant dense<0.000000e+00> : vector<32x128xf32>
    %101 = tpu.matmul %20, %99, %cst_34 {dimension_numbers = #tpu.dot_dimension_numbers<[1], [0], [0], [1], [0, 0, 1, 1], [], []>, precision = #tpu.contract_precision<fp32>} : vector<32x4xf32>, vector<4x128xf32>, vector<32x128xf32> -> vector<32x128xf32>
    %102 = arith.mulf %78, %100 : vector<32x128xf32>
    %103 = arith.addf %102, %101 : vector<32x128xf32>
    %cst_35 = arith.constant 0.000000e+00 : f32
    %104 = vector.broadcast %cst_35 : f32 to vector<32x128xf32>
    %105 = arith.cmpf oge, %103, %104 : vector<32x128xf32>
    %cst_36 = arith.constant 0.00999999977 : f32
    %106 = vector.broadcast %cst_36 : f32 to vector<32x128xf32>
    %107 = arith.mulf %106, %103 : vector<32x128xf32>
    %108 = arith.select %105, %103, %107 : vector<32x128xi1>, vector<32x128xf32>
    %109 = arith.truncf %108 : vector<32x128xf32> to vector<32x128xbf16>
    %c0_37 = arith.constant 0 : index
    %c0_38 = arith.constant 0 : index
    %110 = vector.load %arg5[%c0_37, %c0_38] : memref<128x128xbf16, #tpu.memory_space<vmem>>, vector<128x128xbf16>
    %cst_39 = arith.constant dense<0.000000e+00> : vector<32x128xf32>
    %111 = tpu.matmul %109, %110, %cst_39 {dimension_numbers = #tpu.dot_dimension_numbers<[1], [0], [0], [1], [0, 0, 1, 1], [], []>} : vector<32x128xbf16>, vector<128x128xbf16>, vector<32x128xf32> -> vector<32x128xf32>
    %cst_40 = arith.constant dense<0.000000e+00> : vector<4x128xf32>
    %112 = tpu.matmul %41, %111, %cst_40 {dimension_numbers = #tpu.dot_dimension_numbers<[1], [0], [0], [1], [0, 0, 1, 1], [], []>, precision = #tpu.contract_precision<fp32>} : vector<4x32xf32>, vector<32x128xf32>, vector<4x128xf32> -> vector<4x128xf32>
    %113 = arith.mulf %111, %111 : vector<32x128xf32>
    %cst_41 = arith.constant dense<0.000000e+00> : vector<4x128xf32>
    %114 = tpu.matmul %41, %113, %cst_41 {dimension_numbers = #tpu.dot_dimension_numbers<[1], [0], [0], [1], [0, 0, 1, 1], [], []>, precision = #tpu.contract_precision<fp32>} : vector<4x32xf32>, vector<32x128xf32>, vector<4x128xf32> -> vector<4x128xf32>
    %cst_42 = arith.constant 1.250000e-01 : f32
    %115 = vector.broadcast %cst_42 : f32 to vector<4x128xf32>
    %116 = arith.mulf %112, %115 : vector<4x128xf32>
    %cst_43 = arith.constant 1.250000e-01 : f32
    %117 = vector.broadcast %cst_43 : f32 to vector<4x128xf32>
    %118 = arith.mulf %114, %117 : vector<4x128xf32>
    %119 = arith.mulf %116, %116 : vector<4x128xf32>
    %120 = arith.subf %118, %119 : vector<4x128xf32>
    %cst_44 = arith.constant 0.000000e+00 : f32
    %121 = vector.broadcast %cst_44 : f32 to vector<4x128xf32>
    %122 = arith.maximumf %120, %121 : vector<4x128xf32>
    %123 = vector.extract_strided_slice %42 {offsets = [2, 0], sizes = [1, 128], strides = [1, 1]} : vector<8x128xf32> to vector<1x128xf32>
    %124 = vector.extract_strided_slice %42 {offsets = [6, 0], sizes = [1, 128], strides = [1, 1]} : vector<8x128xf32> to vector<1x128xf32>
    %cst_45 = arith.constant 9.99999974E-6 : f32
    %125 = vector.broadcast %cst_45 : f32 to vector<4x128xf32>
    %126 = arith.addf %122, %125 : vector<4x128xf32>
    %127 = math.rsqrt %126 : vector<4x128xf32>
    %128 = vector.broadcast %123 : vector<1x128xf32> to vector<4x128xf32>
    %129 = arith.mulf %128, %127 : vector<4x128xf32>
    %130 = arith.mulf %116, %129 : vector<4x128xf32>
    %131 = vector.broadcast %124 : vector<1x128xf32> to vector<4x128xf32>
    %132 = arith.subf %131, %130 : vector<4x128xf32>
    %cst_46 = arith.constant dense<0.000000e+00> : vector<32x128xf32>
    %133 = tpu.matmul %20, %129, %cst_46 {dimension_numbers = #tpu.dot_dimension_numbers<[1], [0], [0], [1], [0, 0, 1, 1], [], []>, precision = #tpu.contract_precision<fp32>} : vector<32x4xf32>, vector<4x128xf32>, vector<32x128xf32> -> vector<32x128xf32>
    %cst_47 = arith.constant dense<0.000000e+00> : vector<32x128xf32>
    %134 = tpu.matmul %20, %132, %cst_47 {dimension_numbers = #tpu.dot_dimension_numbers<[1], [0], [0], [1], [0, 0, 1, 1], [], []>, precision = #tpu.contract_precision<fp32>} : vector<32x4xf32>, vector<4x128xf32>, vector<32x128xf32> -> vector<32x128xf32>
    %135 = arith.mulf %111, %133 : vector<32x128xf32>
    %136 = arith.addf %135, %134 : vector<32x128xf32>
    %cst_48 = arith.constant 0.000000e+00 : f32
    %137 = vector.broadcast %cst_48 : f32 to vector<32x128xf32>
    %138 = arith.cmpf oge, %136, %137 : vector<32x128xf32>
    %cst_49 = arith.constant 0.00999999977 : f32
    %139 = vector.broadcast %cst_49 : f32 to vector<32x128xf32>
    %140 = arith.mulf %139, %136 : vector<32x128xf32>
    %141 = arith.select %138, %136, %140 : vector<32x128xi1>, vector<32x128xf32>
    %142 = arith.truncf %141 : vector<32x128xf32> to vector<32x128xbf16>
    %c0_50 = arith.constant 0 : index
    %c0_51 = arith.constant 0 : index
    %143 = vector.load %arg6[%c0_50, %c0_51] : memref<128x128xbf16, #tpu.memory_space<vmem>>, vector<128x128xbf16>
    %cst_52 = arith.constant dense<0.000000e+00> : vector<32x128xf32>
    %144 = tpu.matmul %142, %143, %cst_52 {dimension_numbers = #tpu.dot_dimension_numbers<[1], [0], [0], [1], [0, 0, 1, 1], [], []>} : vector<32x128xbf16>, vector<128x128xbf16>, vector<32x128xf32> -> vector<32x128xf32>
    %cst_53 = arith.constant dense<0.000000e+00> : vector<4x128xf32>
    %145 = tpu.matmul %41, %144, %cst_53 {dimension_numbers = #tpu.dot_dimension_numbers<[1], [0], [0], [1], [0, 0, 1, 1], [], []>, precision = #tpu.contract_precision<fp32>} : vector<4x32xf32>, vector<32x128xf32>, vector<4x128xf32> -> vector<4x128xf32>
    %146 = arith.mulf %144, %144 : vector<32x128xf32>
    %cst_54 = arith.constant dense<0.000000e+00> : vector<4x128xf32>
    %147 = tpu.matmul %41, %146, %cst_54 {dimension_numbers = #tpu.dot_dimension_numbers<[1], [0], [0], [1], [0, 0, 1, 1], [], []>, precision = #tpu.contract_precision<fp32>} : vector<4x32xf32>, vector<32x128xf32>, vector<4x128xf32> -> vector<4x128xf32>
    %cst_55 = arith.constant 1.250000e-01 : f32
    %148 = vector.broadcast %cst_55 : f32 to vector<4x128xf32>
    %149 = arith.mulf %145, %148 : vector<4x128xf32>
    %cst_56 = arith.constant 1.250000e-01 : f32
    %150 = vector.broadcast %cst_56 : f32 to vector<4x128xf32>
    %151 = arith.mulf %147, %150 : vector<4x128xf32>
    %152 = arith.mulf %149, %149 : vector<4x128xf32>
    %153 = arith.subf %151, %152 : vector<4x128xf32>
    %cst_57 = arith.constant 0.000000e+00 : f32
    %154 = vector.broadcast %cst_57 : f32 to vector<4x128xf32>
    %155 = arith.maximumf %153, %154 : vector<4x128xf32>
    %156 = vector.extract_strided_slice %42 {offsets = [3, 0], sizes = [1, 128], strides = [1, 1]} : vector<8x128xf32> to vector<1x128xf32>
    %157 = vector.extract_strided_slice %42 {offsets = [7, 0], sizes = [1, 128], strides = [1, 1]} : vector<8x128xf32> to vector<1x128xf32>
    %cst_58 = arith.constant 9.99999974E-6 : f32
    %158 = vector.broadcast %cst_58 : f32 to vector<4x128xf32>
    %159 = arith.addf %155, %158 : vector<4x128xf32>
    %160 = math.rsqrt %159 : vector<4x128xf32>
    %161 = vector.broadcast %156 : vector<1x128xf32> to vector<4x128xf32>
    %162 = arith.mulf %161, %160 : vector<4x128xf32>
    %163 = arith.mulf %149, %162 : vector<4x128xf32>
    %164 = vector.broadcast %157 : vector<1x128xf32> to vector<4x128xf32>
    %165 = arith.subf %164, %163 : vector<4x128xf32>
    %cst_59 = arith.constant dense<0.000000e+00> : vector<32x128xf32>
    %166 = tpu.matmul %20, %162, %cst_59 {dimension_numbers = #tpu.dot_dimension_numbers<[1], [0], [0], [1], [0, 0, 1, 1], [], []>, precision = #tpu.contract_precision<fp32>} : vector<32x4xf32>, vector<4x128xf32>, vector<32x128xf32> -> vector<32x128xf32>
    %cst_60 = arith.constant dense<0.000000e+00> : vector<32x128xf32>
    %167 = tpu.matmul %20, %165, %cst_60 {dimension_numbers = #tpu.dot_dimension_numbers<[1], [0], [0], [1], [0, 0, 1, 1], [], []>, precision = #tpu.contract_precision<fp32>} : vector<32x4xf32>, vector<4x128xf32>, vector<32x128xf32> -> vector<32x128xf32>
    %168 = arith.mulf %144, %166 : vector<32x128xf32>
    %169 = arith.addf %168, %167 : vector<32x128xf32>
    %cst_61 = arith.constant 0.000000e+00 : f32
    %170 = vector.broadcast %cst_61 : f32 to vector<32x128xf32>
    %171 = arith.cmpf oge, %169, %170 : vector<32x128xf32>
    %cst_62 = arith.constant 0.00999999977 : f32
    %172 = vector.broadcast %cst_62 : f32 to vector<32x128xf32>
    %173 = arith.mulf %172, %169 : vector<32x128xf32>
    %174 = arith.select %171, %169, %173 : vector<32x128xi1>, vector<32x128xf32>
    %c0_63 = arith.constant 0 : index
    %c0_64 = arith.constant 0 : index
    %175 = vector.load %arg7[%c0_63, %c0_64] : memref<32x128xf32, #tpu.memory_space<vmem>>, vector<32x128xf32>
    tpu.vector_store %arg7[%c0_63, %c0_64], %174 {strides = array<i32>} : memref<32x128xf32, #tpu.memory_space<vmem>>, vector<32x128xf32>,
    return
  }
  func.func @transform_0(%arg0: i32) -> (i32, i32) {
    %c0_i32 = arith.constant 0 : i32
    %c0_i32_0 = arith.constant 0 : i32
    %c0_i32_1 = arith.constant 0 : i32
    return %c0_i32, %c0_i32_0 : i32, i32
  }
  func.func @transform_1(%arg0: i32) -> (i32, i32) {
    %c0_i32 = arith.constant 0 : i32
    %c0_i32_0 = arith.constant 0 : i32
    %c0_i32_1 = arith.constant 0 : i32
    return %c0_i32, %c0_i32_0 : i32, i32
  }
  func.func @transform_2(%arg0: i32) -> (i32, i32) {
    %c0_i32 = arith.constant 0 : i32
    %c0_i32_0 = arith.constant 0 : i32
    %c0_i32_1 = arith.constant 0 : i32
    return %c0_i32, %c0_i32_0 : i32, i32
  }
  func.func @transform_3(%arg0: i32) -> (i32, i32) {
    %c0_i32 = arith.constant 0 : i32
    %c0_i32_0 = arith.constant 0 : i32
    %c0_i32_1 = arith.constant 0 : i32
    return %c0_i32, %c0_i32_0 : i32, i32
  }
  func.func @transform_4(%arg0: i32) -> (i32, i32) {
    %c0_i32 = arith.constant 0 : i32
    %c0_i32_0 = arith.constant 0 : i32
    %c0_i32_1 = arith.constant 0 : i32
    return %c0_i32, %c0_i32_0 : i32, i32
  }
  func.func @transform_5(%arg0: i32) -> (i32, i32) {
    %c0_i32 = arith.constant 0 : i32
    %c0_i32_0 = arith.constant 0 : i32
    %c0_i32_1 = arith.constant 0 : i32
    return %c0_i32, %c0_i32_0 : i32, i32
  }
  func.func @transform_6(%arg0: i32) -> (i32, i32) {
    %c0_i32 = arith.constant 0 : i32
    %c0_i32_0 = arith.constant 0 : i32
    %c0_i32_1 = arith.constant 0 : i32
    return %c0_i32, %c0_i32_0 : i32, i32
  }
}

</mosaic_0001>

<bundles_post_ra>
// kernel: tpu_custom_call.1
= control target key start
LH: loop header
LB: loop body
LE: loop exit
PB: predicated region body
PF: predicated region fallthrough
CT: control target
= control target key end

     0   :  { %11 = vsyncpa [#allocation3], 0  ;;  %s13012_s0 = inlined_call_operand.hbm [shape: bf16[32,128], index: 0, kind: input, shape index: {}]   ;;  %s13013_s1 = inlined_call_operand.hbm [shape: f32[8,128], index: 1, kind: input, shape index: {}]   ;;  %s13014_s2 = inlined_call_operand.hbm [shape: bf16[128,128], index: 2, kind: input, shape index: {}]   ;;  %s13015_s3 = inlined_call_operand.hbm [shape: bf16[128,128], index: 3, kind: input, shape index: {}]   ;;  %s13016_s4 = inlined_call_operand.hbm [shape: bf16[128,128], index: 4, kind: input, shape index: {}]   ;;  %s13017_s5 = inlined_call_operand.hbm [shape: bf16[128,128], index: 5, kind: input, shape index: {}]   ;;  %s13018_s6 = inlined_call_operand.hbm [shape: f32[32,128], index: 6, kind: output, shape index: {}]  }
   0x1   :  { %12 = vsyncpa [#allocation6], 0 }
   0x2   :  { %13 = vsyncpa [#allocation9], 0 }
   0x3   :  { %14 = vsyncpa [#allocation12], 0 }
   0x4   :  { %15 = vsyncpa [#allocation4], 0  ;;  %s11796_s21 = smov [#allocation5]   ;;  %s11632_s25 = scalar_lea.hbm %s13013_s1, 128 }
   0x5   :  { %s34_s22 = sshll.u32 %s11796_s21, 4  ;;  %p11633_p0 = scmp.ne.s32.totalorder %s13013_s1, %s11632_s25  ;;  %s35_s22 = int_to_ptr.vmem [resolvable:$true] %s34_s22 }
   0x6   :  { %p11636_p1 = scmp.lt.u32.totalorder %s11632_s25, %s13013_s1 }
   0x8   :  { %p11638_p2 = pnand %p11636_p1, %p11633_p0 }
   0xa   :  { %11641 = shalt.err (!%p11638_p2)
}
   0xb   :  { %s11642_s30 = scalar_lea.vmem %s35_s22, 128  ;;  %p11647_p4 = scmp.lt.s32.totalorder %s35_s22, %s35_s22 }
   0xc   :  { %p11643_p3 = scmp.ne.s32.totalorder %s35_s22, %s11642_s30  ;;  %p11648_p5 = scmp.lt.s32.totalorder %s11642_s30, %s11642_s30 }
   0xe   :  { %p11649_p6 = por %p11648_p5, %p11647_p4 }
  0x10   :  { %p11650_p7 = pnand %p11649_p6, %p11643_p3 }
  0x12   :  { %11653 = shalt.err (!%p11650_p7)
}
  0x13   :  { %37 = dma.hbm_to_vmem [thread:$0]  %s13013_s1, 128, %s35_s22, [#allocation6]  }
  0x14   :  { %s11797_s9 = smov [#allocation8]   ;;  %s11798_s11 = smov [#allocation2]  }
  0x15   :  { %s55_s10 = sshll.u32 %s11797_s9, 4  ;;  %s21_s12 = sshll.u32 %s11798_s11, 4  ;;  %s56_s10 = int_to_ptr.vmem [resolvable:$true] %s55_s10  ;;  %s22_s12 = int_to_ptr.vmem [resolvable:$true] %s21_s12 }
  0x16   :  { %s11654_s15 = scalar_lea.hbm %s13015_s3, 1024 }
  0x17   :  { %p11655_p8 = scmp.ne.s32.totalorder %s13015_s3, %s11654_s15  ;;  %p11658_p9 = scmp.lt.u32.totalorder %s11654_s15, %s13015_s3 }
  0x19   :  { %p11660_p10 = pnand %p11658_p9, %p11655_p8 }
  0x1b   :  { %11663 = shalt.err (!%p11660_p10)
}
  0x1c   :  { %s11664_s1 = scalar_lea.vmem %s56_s10, 1024  ;;  %p11669_p12 = scmp.lt.s32.totalorder %s56_s10, %s56_s10 }
  0x1d   :  { %p11665_p11 = scmp.ne.s32.totalorder %s56_s10, %s11664_s1  ;;  %p11670_p13 = scmp.lt.s32.totalorder %s11664_s1, %s11664_s1 }
  0x1f   :  { %p11671_p0 = por %p11670_p13, %p11669_p12 }
  0x21   :  { %p11672_p1 = pnand %p11671_p0, %p11665_p11 }
  0x23   :  { %11675 = shalt.err (!%p11672_p1)
}
  0x24   :  { %s11799_s20 = smov 64   ;;  %s11800_s21 = smov 4  }
  0x25   :  { %61 = dma.hbm_to_vmem [thread:$0]  %s13015_s3, 1024, %s56_s10, [#allocation9], %s11799_s20, %s11799_s20, %s11800_s21  }
  0x26   :  { %s11676_s26 = scalar_lea.hbm %s13012_s0, 256 }
  0x27   :  { %p11677_p2 = scmp.ne.s32.totalorder %s13012_s0, %s11676_s26  ;;  %p11680_p3 = scmp.lt.u32.totalorder %s11676_s26, %s13012_s0 }
  0x29   :  { %p11682_p4 = pnand %p11680_p3, %p11677_p2 }
  0x2b   :  { %11685 = shalt.err (!%p11682_p4)
}
  0x2c   :  { %s11686_s7 = scalar_lea.vmem %s22_s12, 256  ;;  %p11691_p6 = scmp.lt.s32.totalorder %s22_s12, %s22_s12 }
  0x2d   :  { %p11687_p5 = scmp.ne.s32.totalorder %s22_s12, %s11686_s7  ;;  %p11692_p7 = scmp.lt.s32.totalorder %s11686_s7, %s11686_s7 }
  0x2f   :  { %p11693_p8 = por %p11692_p7, %p11691_p6 }
  0x31   :  { %p11694_p9 = pnand %p11693_p8, %p11687_p5 }
  0x33   :  { %11697 = shalt.err (!%p11694_p9)
}
  0x34   :  { %27 = dma.hbm_to_vmem [thread:$0]  %s13012_s0, 256, %s22_s12, [#allocation3], %s11799_s20, %s11799_s20, %s11800_s21  }
  0x35   :  { %s11801_s9 = smov [#allocation7]   ;;  %s11802_s11 = smov [#allocation10]  }
  0x36   :  { %s43_s10 = sshll.u32 %s11801_s9, 4  ;;  %s67_s13 = sshll.u32 %s11802_s11, 4  ;;  %s44_s10 = int_to_ptr.vmem [resolvable:$true] %s43_s10  ;;  %s68_s13 = int_to_ptr.vmem [resolvable:$true] %s67_s13 }
  0x37   :  { %s11698_s16 = scalar_lea.hbm %s13014_s2, 1024 }
  0x38   :  { %p11699_p10 = scmp.ne.s32.totalorder %s13014_s2, %s11698_s16  ;;  %p11702_p11 = scmp.lt.u32.totalorder %s11698_s16, %s13014_s2 }
  0x3a   :  { %p11704_p12 = pnand %p11702_p11, %p11699_p10 }
  0x3c   :  { %11707 = shalt.err (!%p11704_p12)
}
  0x3d   :  { %s11708_s0 = scalar_lea.vmem %s44_s10, 1024  ;;  %p11713_p0 = scmp.lt.s32.totalorder %s44_s10, %s44_s10 }
  0x3e   :  { %p11709_p13 = scmp.ne.s32.totalorder %s44_s10, %s11708_s0  ;;  %p11714_p1 = scmp.lt.s32.totalorder %s11708_s0, %s11708_s0 }
  0x40   :  { %p11715_p2 = por %p11714_p1, %p11713_p0 }
  0x42   :  { %p11716_p3 = pnand %p11715_p2, %p11709_p13 }
  0x44   :  { %11719 = shalt.err (!%p11716_p3)
}
  0x45   :  { %49 = dma.hbm_to_vmem [thread:$0]  %s13014_s2, 1024, %s44_s10, [#allocation6], %s11799_s20, %s11799_s20, %s11800_s21  }
  0x46   :  { %s11720_s25 = scalar_lea.hbm %s13016_s4, 1024 }
  0x47   :  { %p11721_p4 = scmp.ne.s32.totalorder %s13016_s4, %s11720_s25  ;;  %p11724_p5 = scmp.lt.u32.totalorder %s11720_s25, %s13016_s4 }
  0x49   :  { %p11726_p6 = pnand %p11724_p5, %p11721_p4 }
  0x4b   :  { %11729 = shalt.err (!%p11726_p6)
}
  0x4c   :  { %s11730_s30 = scalar_lea.vmem %s68_s13, 1024  ;;  %p11735_p8 = scmp.lt.s32.totalorder %s68_s13, %s68_s13 }
  0x4d   :  { %p11731_p7 = scmp.ne.s32.totalorder %s68_s13, %s11730_s30  ;;  %p11736_p9 = scmp.lt.s32.totalorder %s11730_s30, %s11730_s30 }
  0x4f   :  { %p11737_p10 = por %p11736_p9, %p11735_p8 }
  0x51   :  { %p11738_p11 = pnand %p11737_p10, %p11731_p7 }
  0x53   :  { %11741 = shalt.err (!%p11738_p11)
}
  0x54   :  { %73 = dma.hbm_to_vmem [thread:$0]  %s13016_s4, 1024, %s68_s13, [#allocation9], %s11799_s20, %s11799_s20, %s11800_s21  }
  0x55   :  { %s11803_s3 = smov [#allocation11]   ;;  %s11742_s11 = scalar_lea.hbm %s13017_s5, 1024 }
  0x56   :  { %s79_s8 = sshll.u32 %s11803_s3, 4  ;;  %p11743_p12 = scmp.ne.s32.totalorder %s13017_s5, %s11742_s11  ;;  %s80_s8 = int_to_ptr.vmem [resolvable:$true] %s79_s8 }
  0x57   :  { %p11746_p13 = scmp.lt.u32.totalorder %s11742_s11, %s13017_s5 }
  0x59   :  { %p11748_p0 = pnand %p11746_p13, %p11743_p12 }
  0x5b   :  { %11751 = shalt.err (!%p11748_p0)
}
  0x5c   :  { %s11752_s18 = scalar_lea.vmem %s80_s8, 1024  ;;  %p11757_p2 = scmp.lt.s32.totalorder %s80_s8, %s80_s8 }
  0x5d   :  { %p11753_p1 = scmp.ne.s32.totalorder %s80_s8, %s11752_s18  ;;  %p11758_p3 = scmp.lt.s32.totalorder %s11752_s18, %s11752_s18 }
  0x5f   :  { %p11759_p4 = por %p11758_p3, %p11757_p2 }
  0x61   :  { %p11760_p5 = pnand %p11759_p4, %p11753_p1 }
  0x63   :  { %11763 = shalt.err (!%p11760_p5)
}
  0x64   :  { %85 = dma.hbm_to_vmem [thread:$0]  %s13017_s5, 1024, %s80_s8, [#allocation12], %s11799_s20, %s11799_s20, %s11800_s21  }
  0x65   :  { %11786 = dma.done.wait [#allocation3], 256  }
  0x66   :  { %11787 = vsyncadd [#allocation3], 4294967040 }
  0x67   :  { %11788 = dma.done.wait [#allocation6], 1152  }
  0x68   :  { %11789 = vsyncadd [#allocation6], 4294966144 }
  0x69   :  { %11790 = dma.done.wait [#allocation9], 2048  }
  0x6a   :  { %11791 = vsyncadd [#allocation9], 4294965248 }
  0x6b   :  { %11792 = dma.done.wait [#allocation12], 1024  }
  0x6c   :  { %11793 = vsyncadd [#allocation12], 4294966272  ;;  %v11589_v0 = vld [vmem:[#allocation7] sm:$0xff]   ;;  %v11590_v1 = vld [vmem:[#allocation7 + $0x8] sm:$0xff]   ;;  %v11804_v10 = vmov 0.0|0.0   ;;  %vm11805_vm0 = vmmov 0   ;;  %v105_v12 = vlaneseq }
  0x6d   :  { %10055 = vmatprep.subr.bf16.mxu0 %v11589_v0  ;;  %v11591_v2 = vld [vmem:[#allocation7 + $0x10] sm:$0xff]   ;;  %v11592_v3 = vld [vmem:[#allocation7 + $0x18] sm:$0xff]   ;;  %v11597_v4 = vld [vmem:[#allocation2] sm:$0xff]   ;;  %11047 = vmatprep.subr.bf16.mxu1 %v11804_v10  ;;  %v13019_v11 = vmov 0.0   ;;  %vm317_vm2 = vcmask 261120   ;;  %vm1313_vm4 = vcmask 31744  }
  0x6e   :  { %10056 = vmatpush3.bf16.msra.mxu0 %v11589_v0  ;;  %v11593_v5 = vld [vmem:[#allocation7 + $0x20] sm:$0xff]   ;;  %10071 = vmatprep.mubr.bf16.mxu0 %v11597_v4  ;;  %v11594_v6 = vld [vmem:[#allocation7 + $0x28] sm:$0xff]   ;;  %v11595_v7 = vld [vmem:[#allocation7 + $0x30] sm:$0xff]   ;;  %v11938_v13 = vand.u32 127, %v105_v12  ;;  %v11940_v14 = vshrl.u32 %v105_v12, 7  ;;  %vm1326_vm8 = vcmask 1043456  }
  0x6f   :  { %10057 = vmatprep.subr.bf16.mxu0 %v11590_v1  ;;  %v11596_v8 = vld [vmem:[#allocation7 + $0x38] sm:$0xff]   ;;  %v11598_v9 = vld [vmem:[#allocation2 + $0x8] sm:$0xff]   ;;  %10083 = vmatprep.mubr.msk.f32.mxu1 %vm11805_vm0, %v13019_v11  ;;  %s11807_s5 = smov [#allocation13]  }
  0x70   :  { %v176_v15 = vand.u32 3, %v11938_v13  ;;  %s9361_s20 = sshll.u32 %s11807_s5, 4  ;;  %s9362_s20 = int_to_ptr.vmem [resolvable:$true] %s9361_s20 }
  0x71   :  { %s11764_s21 = scalar_lea.vmem %s9362_s20, 512  ;;  %p11769_p7 = scmp.lt.s32.totalorder %s9362_s20, %s9362_s20 }
  0x72   :  { %10058 = vmatpush3.bf16.msra.mxu0 %v11590_v1  ;;  %vm184_vm1 = vcmp.eq.s32.totalorder %v176_v15, %v11940_v14  ;;  %p11765_p6 = scmp.ne.s32.totalorder %s9362_s20, %s11764_s21  ;;  %p11770_p8 = scmp.lt.s32.totalorder %s11764_s21, %s11764_s21 }
  0x73   :  { %10059 = vmatprep.subr.bf16.mxu0 %v11591_v2  ;;  %v11945_v16 = vsel %vm184_vm1, 1.0, %v13019_v11 }
  0x74   :  { %v319_v17 = vsel %vm317_vm2, %v11945_v16, 0  ;;  %p11771_p9 = por %p11770_p8, %p11769_p7 }
  0x75   :  { %v11949_v18 = vsub.f32 %v319_v17, %v319_v17 }
  0x76   :  { %10060 = vmatpush3.bf16.msra.mxu0 %v11591_v2  ;;  %p11772_p10 = pnand %p11771_p9, %p11765_p6 }
  0x77   :  { %10061 = vmatprep.subr.bf16.mxu0 %v11592_v3  ;;  %v11952_v19 = vand.u32 4294901760, %v11949_v18 }
  0x79   :  { %v393_v20 = vsub.f32 %v11949_v18, %v11952_v19 }
  0x7a   :  { %10062 = vmatpush3.bf16.msra.mxu0 %v11592_v3 }
  0x7b   :  { %10063 = vmatprep.subr.bf16.mxu0 %v11593_v5  ;;  %v11968_v28 = vand.u32 4294901760, %v393_v20 }
  0x7e   :  { %10064 = vmatpush3.bf16.msra.mxu0 %v11593_v5 }
  0x7f   :  { %10065 = vmatprep.subr.bf16.mxu0 %v11594_v6 }
  0x82   :  { %10066 = vmatpush3.bf16.msra.mxu0 %v11594_v6 }
  0x83   :  { %10067 = vmatprep.subr.bf16.mxu0 %v11595_v7 }
  0x86   :  { %10068 = vmatpush3.bf16.msra.mxu0 %v11595_v7 }
  0x87   :  { %10069 = vmatprep.subr.bf16.mxu0 %v11596_v8 }
  0x8a   :  { %10070 = vmatpush3.bf16.msra.mxu0 %v11596_v8 }
  0x8b   :  { %11083 = vmatprep.subr.bf16.mxu0 %v11804_v10 }
  0x8d   :  { %10072 = vmatmul.mubr.bf16.vlgmr.msra.gmra.mrb[0].mxu0 %v11598_v9 }
  0x8e   :  { %10149 = vmatprep.mubr.msk.f32.mxu0 %vm11805_vm0, %v13019_v11 }
 0x160   :  { %v11956_v21 = vpop.f32.mrb[0].mxu0 }
 0x161   :  { %v328_v22 = vand.u32 4294901760, %v11956_v21  ;;  %v808_v23 = vmul.f32 %v11956_v21, %v11956_v21  ;;  %v11961_v24 = vpop.f32.mrb[1].mxu0 }
 0x162   :  { %v322_v25 = vand.u32 4294901760, %v11961_v24  ;;  %v806_v26 = vmul.f32 %v11961_v24, %v11961_v24  ;;  %v11966_v27 = vpop.f32.mrb[2].mxu0 }
 0x163   :  { %v11971_v29 = vsub.f32 %v11956_v21, %v328_v22  ;;  %v817_v30 = vand.u32 4294901760, %v808_v23  ;;  %v331_v31 = vand.u32 4294901760, %v11966_v27  ;;  %v809_v32 = vmul.f32 %v11966_v27, %v11966_v27  ;;  %v11976_v33 = vpop.f32.mrb[3].mxu0 }
 0x164   :  { %v11979_v34 = vsub.f32 %v11961_v24, %v322_v25  ;;  %v811_v35 = vand.u32 4294901760, %v806_v26  ;;  %v325_v36 = vand.u32 4294901760, %v11976_v33  ;;  %v807_v37 = vmul.f32 %v11976_v33, %v11976_v33 }
 0x165   :  { %v417_v38 = vand.u32 4294901760, %v11971_v29  ;;  %v11985_v39 = vsub.f32 %v808_v23, %v817_v30  ;;  %v11988_v40 = vsub.f32 %v11966_v27, %v331_v31  ;;  %v820_v41 = vand.u32 4294901760, %v809_v32 }
 0x166   :  { %v403_v42 = vand.u32 4294901760, %v11979_v34  ;;  %v11991_v43 = vsub.f32 %v806_v26, %v811_v35  ;;  %v11994_v44 = vsub.f32 %v11976_v33, %v325_v36  ;;  %v814_v45 = vand.u32 4294901760, %v807_v37 }
 0x167   :  { %v424_v46 = vand.u32 4294901760, %v11988_v40  ;;  %v11997_v47 = vsub.f32 %v809_v32, %v820_v41  ;;  %v11999_v48 = vpack.c.bf16 %v325_v36, %v322_v25  ;;  %v12001_v49 = vpack.c.bf16 %v331_v31, %v328_v22 }
 0x168   :  { %v410_v50 = vand.u32 4294901760, %v11994_v44  ;;  %v898_v51 = vsub.f32 %v807_v37, %v814_v45  ;;  %v12004_v52 = vpack.c.bf16 %v814_v45, %v811_v35  ;;  %v12006_v53 = vpack.c.bf16 %v820_v41, %v817_v30 }
 0x169   :  { %11049 = vmatpush3.bf16.msra.mxu1 %v11999_v48  ;;  %v404_v54 = vsub.f32 %v11979_v34, %v403_v42  ;;  %v892_v55 = vand.u32 4294901760, %v11991_v43  ;;  %v418_v56 = vsub.f32 %v11971_v29, %v417_v38  ;;  %v425_v57 = vsub.f32 %v11988_v40, %v424_v46 }
 0x16a   :  { %11085 = vmatpush3.bf16.msra.mxu0 %v12004_v52  ;;  %11050 = vmatprep.subr.bf16.mxu1 %v11804_v10  ;;  %v411_v58 = vsub.f32 %v11994_v44, %v410_v50  ;;  %v899_v59 = vand.u32 4294901760, %v898_v51  ;;  %v906_v60 = vand.u32 4294901760, %v11985_v39  ;;  %v913_v61 = vand.u32 4294901760, %v11997_v47 }
 0x16b   :  { %11086 = vmatprep.subr.bf16.mxu0 %v11804_v10  ;;  %v405_v62 = vand.u32 4294901760, %v404_v54  ;;  %v893_v63 = vsub.f32 %v11991_v43, %v892_v55  ;;  %v419_v0 = vand.u32 4294901760, %v418_v56  ;;  %v426_v1 = vand.u32 4294901760, %v425_v57 }
 0x16c   :  { %v412_v2 = vand.u32 4294901760, %v411_v58  ;;  %v900_v3 = vsub.f32 %v898_v51, %v899_v59  ;;  %v907_v4 = vsub.f32 %v11985_v39, %v906_v60  ;;  %v914_v5 = vsub.f32 %v11997_v47, %v913_v61 }
 0x16d   :  { %11052 = vmatpush3.bf16.msra.mxu1 %v12001_v49  ;;  %v894_v6 = vand.u32 4294901760, %v893_v63  ;;  %v11057_v7 = vpack.c.bf16 %v426_v1, %v419_v0  ;;  %v11060_v8 = vpack.c.bf16 %v11994_v44, %v11979_v34  ;;  %v11096_v9 = vpack.c.bf16 %v898_v51, %v11991_v43  ;;  %v12141_v1 = vld [vmem:[#allocation5] sm:$0xff] }
 0x16e   :  { %11088 = vmatpush3.bf16.msra.mxu0 %v12006_v53  ;;  %11053 = vmatprep.subr.bf16.mxu1 %v11804_v10  ;;  %v11054_v12 = vpack.c.bf16 %v412_v2, %v405_v62  ;;  %v901_v15 = vand.u32 4294901760, %v900_v3  ;;  %v908_v17 = vand.u32 4294901760, %v907_v4  ;;  %v915_v20 = vand.u32 4294901760, %v914_v5 }
 0x16f   :  { %11089 = vmatprep.subr.bf16.mxu0 %v11804_v10  ;;  %v11063_v22 = vpack.c.bf16 %v11988_v40, %v11971_v29  ;;  %v11099_v23 = vpack.c.bf16 %v11997_v47, %v11985_v39  ;;  %v11072_v25 = vpack.c.bf16 %v410_v50, %v403_v42  ;;  %v11108_v26 = vpack.c.bf16 %v899_v59, %v892_v55 }
 0x170   :  { %10084 = vmatmul.mubr.f32.vlgmr.msra.gmra.mrb[0].mxu1 %v11968_v28  ;;  %v11090_v30 = vpack.c.bf16 %v901_v15, %v894_v6  ;;  %v11093_v31 = vpack.c.bf16 %v915_v20, %v908_v17  ;;  %v11075_v32 = vpack.c.bf16 %v424_v46, %v417_v38  ;;  %v11111_v34 = vpack.c.bf16 %v913_v61, %v906_v60 }
 0x171   :  { %11055 = vmatpush3.bf16.msra.mxu1 %v11054_v12  ;;  %10150 = vmatmul.mubr.f32.vlgmr.msra.gmra.mrb[4].mxu0 %v11968_v28  ;;  %v114_v29 = vand.u32 3, %v11940_v14  ;;  %v107_v41 = vadd.s32 8, %v11940_v14  ;;  %v108_v42 = vadd.s32 16, %v11940_v14  ;;  %v109_v45 = vadd.s32 24, %v11940_v14 }
 0x172   :  { %11091 = vmatpush3.bf16.msra.mxu0 %v11090_v30  ;;  %11056 = vmatprep.subr.bf16.mxu1 %v11804_v10  ;;  %v1304_v63 = vsub.s32 0, %v11940_v14  ;;  %v1310_v5 = vsub.s32 4, %v11940_v14 }
 0x173   :  { %11092 = vmatprep.subr.bf16.mxu0 %v11804_v10  ;;  %10094 = vmatprep.mubr.msk.f32.mxu1 %vm11805_vm0, %v13019_v11  ;;  %vm160_vm3 = vcmp.eq.s32.totalorder %v114_v29, %v11938_v13  ;;  %v121_v44 = vand.u32 3, %v107_v41 }
 0x174   :  { %10160 = vmatprep.mubr.msk.f32.mxu0 %vm11805_vm0, %v13019_v11  ;;  %v12100_v35 = vsel %vm160_vm3, 1.0, %v13019_v11  ;;  %v1305_v4 = vrot.slane %v12141_v1, %v1304_v63  ;;  %v1311_v15 = vrot.slane %v12141_v1, %v1310_v5 }
 0x175   :  { %11058 = vmatpush3.bf16.msra.mxu1 %v11057_v7  ;;  %v1315_v36 = vsel %vm1313_vm4, %v12100_v35, 0  ;;  %vm161_vm5 = vcmp.eq.s32.totalorder %v121_v44, %v11938_v13 }
 0x176   :  { %11094 = vmatpush3.bf16.msra.mxu0 %v11093_v31  ;;  %11059 = vmatprep.subr.bf16.mxu1 %v11804_v10  ;;  %v12104_v37 = vsub.f32 %v1315_v36, %v1315_v36  ;;  %v12121_v56 = vsel %vm161_vm5, 1.0, %v13019_v11 }
 0x177   :  { %11095 = vmatprep.subr.bf16.mxu0 %v11804_v10  ;;  %v1318_v59 = vsel %vm1313_vm4, %v12121_v56, 0 }
 0x178   :  { %10095 = vmatmul.mubr.msk.f32.vlgmr.msra.gmra.mrb[0].mxu1 %vm317_vm2, %v11945_v16  ;;  %v12107_v38 = vand.u32 4294901760, %v12104_v37  ;;  %v12134_v62 = vsub.f32 %v1318_v59, %v1318_v59 }
 0x179   :  { %11061 = vmatpush3.bf16.msra.mxu1 %v11060_v8  ;;  %10161 = vmatmul.mubr.msk.f32.vlgmr.msra.gmra.mrb[4].mxu0 %vm317_vm2, %v11945_v16 }
 0x17a   :  { %11097 = vmatpush3.bf16.msra.mxu0 %v11096_v9  ;;  %11062 = vmatprep.subr.bf16.mxu1 %v11804_v10  ;;  %v1399_v39 = vsub.f32 %v12104_v37, %v12107_v38  ;;  %v12144_v2 = vand.u32 4294901760, %v12134_v62 }
 0x17b   :  { %11098 = vmatprep.subr.bf16.mxu0 %v11804_v10  ;;  %10105 = vmatprep.mubr.msk.f32.mxu1 %vm11805_vm0, %v13019_v11 }
 0x17c   :  { %10171 = vmatprep.mubr.msk.f32.mxu0 %vm11805_vm0, %v13019_v11  ;;  %v12111_v40 = vand.u32 4294901760, %v1399_v39  ;;  %v1409_v8 = vsub.f32 %v12134_v62, %v12144_v2 }
 0x17d   :  { %11064 = vmatpush3.bf16.msra.mxu1 %v11063_v22 }
 0x17e   :  { %11100 = vmatpush3.bf16.msra.mxu0 %v11099_v23  ;;  %11065 = vmatprep.subr.bf16.mxu1 %v11804_v10 }
 0x17f   :  { %11101 = vmatprep.subr.bf16.mxu0 %v11804_v10 }
 0x180   :  { %10106 = vmatmul.mubr.f32.vlgmr.msra.gmra.mrb[0].mxu1 %v11949_v18 }
 0x181   :  { %11067 = vmatpush3.bf16.msra.mxu1 %v11999_v48  ;;  %10172 = vmatmul.mubr.f32.vlgmr.msra.gmra.mrb[4].mxu0 %v11949_v18 }
 0x182   :  { %11103 = vmatpush3.bf16.msra.mxu0 %v12004_v52  ;;  %11068 = vmatprep.subr.bf16.mxu1 %v11804_v10 }
 0x183   :  { %11104 = vmatprep.subr.bf16.mxu0 %v11804_v10  ;;  %10116 = vmatprep.mubr.msk.f32.mxu1 %vm11805_vm0, %v13019_v11 }
 0x184   :  { %10182 = vmatprep.mubr.msk.f32.mxu0 %vm11805_vm0, %v13019_v11 }
 0x185   :  { %11070 = vmatpush3.bf16.msra.mxu1 %v12001_v49 }
 0x186   :  { %11106 = vmatpush3.bf16.msra.mxu0 %v12006_v53  ;;  %11071 = vmatprep.subr.bf16.mxu1 %v11804_v10 }
 0x187   :  { %11107 = vmatprep.subr.bf16.mxu0 %v11804_v10 }
 0x188   :  { %10117 = vmatmul.mubr.f32.vlgmr.msra.gmra.mrb[0].mxu1 %v11952_v19 }
 0x189   :  { %11073 = vmatpush3.bf16.msra.mxu1 %v11072_v25  ;;  %10183 = vmatmul.mubr.f32.vlgmr.msra.gmra.mrb[4].mxu0 %v11952_v19  ;;  %v12164_v25 = vand.u32 4294901760, %v1409_v8 }
 0x18a   :  { %11109 = vmatpush3.bf16.msra.mxu0 %v11108_v26  ;;  %11074 = vmatprep.subr.bf16.mxu1 %v11804_v10 }
 0x18b   :  { %11110 = vmatprep.subr.bf16.mxu0 %v11804_v10  ;;  %10127 = vmatprep.mubr.msk.f32.mxu1 %vm11805_vm0, %v13019_v11 }
 0x18c   :  { %10193 = vmatprep.mubr.msk.f32.mxu0 %vm11805_vm0, %v13019_v11 }
 0x18d   :  { %11076 = vmatpush3.bf16.msra.mxu1 %v11075_v32 }
 0x18e   :  { %11112 = vmatpush3.bf16.msra.mxu0 %v11111_v34  ;;  %11077 = vmatprep.subr.bf16.mxu1 %v11804_v10 }
 0x18f   :  { %11113 = vmatprep.subr.bf16.mxu0 %v11804_v10 }
 0x190   :  { %10128 = vmatmul.mubr.msk.f32.vlgmr.msra.gmra.mrb[0].mxu1 %vm317_vm2, %v11945_v16 }
 0x191   :  { %11079 = vmatpush3.bf16.msra.mxu1 %v11999_v48  ;;  %10194 = vmatmul.mubr.msk.f32.vlgmr.msra.gmra.mrb[4].mxu0 %vm317_vm2, %v11945_v16 }
 0x192   :  { %11115 = vmatpush3.bf16.msra.mxu0 %v12004_v52  ;;  %11080 = vmatprep.subr.bf16.mxu1 %v11804_v10 }
 0x193   :  { %11116 = vmatprep.subr.bf16.mxu0 %v11804_v10  ;;  %10138 = vmatprep.mubr.msk.f32.mxu1 %vm11805_vm0, %v13019_v11 }
 0x194   :  { %10204 = vmatprep.mubr.msk.f32.mxu0 %vm11805_vm0, %v13019_v11 }
 0x195   :  { %11082 = vmatpush3.bf16.msra.mxu1 %v12001_v49  ;;  %v128_v49 = vand.u32 3, %v108_v42 }
 0x196   :  { %11118 = vmatpush3.bf16.msra.mxu0 %v12006_v53  ;;  %v135_v53 = vand.u32 3, %v109_v45 }
 0x197   :  { %vm162_vm6 = vcmp.eq.s32.totalorder %v128_v49, %v11938_v13  ;;  %v11601_v49 = vld [vmem:[#allocation8 + $0x10] sm:$0xff]  }
 0x198   :  { %10139 = vmatmul.mubr.msk.f32.vlgmr.msra.gmra.mrb[0].mxu1 %vm317_vm2, %v11945_v16  ;;  %v12124_v57 = vsel %vm162_vm6, 1.0, %v13019_v11  ;;  %vm163_vm7 = vcmp.eq.s32.totalorder %v135_v53, %v11938_v13  ;;  %v11605_v53 = vld [vmem:[#allocation8 + $0x30] sm:$0xff]  }
 0x199   :  { %10205 = vmatmul.mubr.msk.f32.vlgmr.msra.gmra.mrb[4].mxu0 %vm317_vm2, %v11945_v16  ;;  %10209 = vmatprep.mubr.f32.mxu1 %v12111_v40  ;;  %v1321_v60 = vsel %vm1313_vm4, %v12124_v57, 0  ;;  %v12132_v61 = vsel %vm163_vm7, 1.0, %v13019_v11 }
 0x19a   :  { %10257 = vmatprep.mubr.f32.mxu0 %v12111_v40  ;;  %v12137_v0 = vsub.f32 %v1321_v60, %v1321_v60  ;;  %v1324_v13 = vsel %vm1313_vm4, %v12132_v61, 0 }
 0x19b   :  { %v12146_v3 = vsub.f32 %v1324_v13, %v1324_v13 }
 0x19c   :  { %v12151_v6 = vand.u32 4294901760, %v12137_v0 }
 0x19d   :  { %v12156_v9 = vand.u32 4294901760, %v12146_v3 }
 0x19e   :  { %v1419_v17 = vsub.f32 %v12137_v0, %v12151_v6 }
 0x19f   :  { %v1429_v26 = vsub.f32 %v12146_v3, %v12156_v9 }
 0x1a0   :  { %v12168_v31 = vand.u32 4294901760, %v1419_v17 }
 0x1a1   :  { %v12177_v36 = vand.u32 4294901760, %v1429_v26 }
 0x26b   :  { %v802_v43 = vpop.f32.mrb[0].mxu1 }
 0x26c   :  { %v1295_v46 = vmul.f32 0.125, %v802_v43  ;;  %v10140_v47 = vpop.f32.mrb[1].mxu1  ;;  %v1291_v48 = vpop.f32.mrb[4].mxu0 }
 0x26d   :  { %v1296_v50 = vmul.f32 0.125, %v1291_v48  ;;  %v10206_v51 = vpop.f32.mrb[5].mxu0  ;;  %v11599_v47 = vld [vmem:[#allocation8] sm:$0xff]   ;;  %v11600_v48 = vld [vmem:[#allocation8 + $0x8] sm:$0xff]  }
 0x26e   :  { %v1297_v52 = vmul.f32 %v1295_v46, %v1295_v46  ;;  %v11603_v51 = vld [vmem:[#allocation8 + $0x20] sm:$0xff]  }
 0x270   :  { %v1298_v54 = vsub.f32 %v1296_v50, %v1297_v52  ;;  %v11602_v50 = vld [vmem:[#allocation8 + $0x18] sm:$0xff]   ;;  %v11604_v52 = vld [vmem:[#allocation8 + $0x28] sm:$0xff]  }
 0x272   :  { %v1299_v55 = vmax.f32 %v1298_v54, 0.0  ;;  %v11606_v54 = vld [vmem:[#allocation8 + $0x38] sm:$0xff]  }
 0x274   :  { %v1300_v58 = vadd.f32 1e-05, %v1299_v55 }
 0x276   :  { %11623 = vrsqrt.f32 %v1300_v58 }
 0x280   :  { %v11624_v7 = vpop.eup %11623 }
 0x281   :  { %v1306_v12 = vmul.f32 %v11624_v7, %v1305_v4 }
 0x283   :  { %v1307_v20 = vmul.f32 %v1306_v12, %v1295_v46  ;;  %v1328_v22 = vsel %vm1326_vm8, %v1306_v12, 0 }
 0x284   :  { %v12162_v23 = vand.u32 4294901760, %v1328_v22 }
 0x285   :  { %v1312_v30 = vsub.f32 %v1311_v15, %v1307_v20 }
 0x286   :  { %10207 = vmatprep.subr.mxu1 %v12162_v23  ;;  %v1438_v32 = vsub.f32 %v1328_v22, %v12162_v23 }
 0x287   :  { %v1906_v34 = vsel %vm1326_vm8, %v1312_v30, 0  ;;  %10208 = vmatpush3.msra.mxu1 %v12162_v23 }
 0x288   :  { %v12174_v29 = vand.u32 4294901760, %v1906_v34  ;;  %10210 = vmatmul.mubr.f32.vlgmr.msra.gmra.mrb[2].mxu1 %v12164_v25  ;;  %v1439_v39 = vand.u32 4294901760, %v1438_v32 }
 0x289   :  { %10212 = vmatprep.mubr.f32.mxu1 %v12168_v31 }
 0x28a   :  { %10255 = vmatprep.subr.mxu0 %v12174_v29  ;;  %v1440_v41 = vsub.f32 %v1438_v32, %v1439_v39  ;;  %v2016_v42 = vsub.f32 %v1906_v34, %v12174_v29 }
 0x28b   :  { %10256 = vmatpush3.msra.mxu0 %v12174_v29 }
 0x28c   :  { %10213 = vmatmul.mubr.f32.gmra.mrb[4].mxu1 %v12177_v36  ;;  %10258 = vmatmul.mubr.f32.vlgmr.msra.gmra.mrb[6].mxu0 %v12164_v25  ;;  %v1441_v43 = vand.u32 4294901760, %v1440_v41  ;;  %v2017_v44 = vand.u32 4294901760, %v2016_v42 }
 0x28d   :  { %10217 = vmatprep.mubr.msk.f32.mxu1 %vm1313_vm4, %v12100_v35  ;;  %10260 = vmatprep.mubr.f32.mxu0 %v12168_v31 }
 0x28e   :  { %10215 = vmatprep.subr.mxu1 %v1441_v43  ;;  %v2018_v45 = vsub.f32 %v2016_v42, %v2017_v44 }
 0x28f   :  { %10216 = vmatpush3.msra.mxu1 %v1441_v43 }
 0x290   :  { %10218 = vmatmul.mubr.msk.f32.vlgmr.msra.gmra.mrb[2].mxu1 %vm1313_vm4, %v12121_v56  ;;  %10223 = vmatprep.subr.mxu1 %v1438_v32  ;;  %v2019_v46 = vand.u32 4294901760, %v2018_v45 }
 0x291   :  { %10261 = vmatmul.mubr.f32.gmra.mrb[8].mxu0 %v12177_v36  ;;  %10224 = vmatpush3.msra.mxu1 %v1438_v32 }
 0x292   :  { %10231 = vmatprep.subr.mxu1 %v12162_v23  ;;  %10263 = vmatprep.subr.mxu0 %v2019_v46 }
 0x293   :  { %10220 = vmatprep.mubr.msk.f32.mxu1 %vm1313_vm4, %v12124_v57  ;;  %10264 = vmatpush3.msra.mxu0 %v2019_v46 }
 0x294   :  { %10265 = vmatprep.mubr.msk.f32.mxu0 %vm1313_vm4, %v12100_v35  ;;  %10221 = vmatmul.mubr.msk.f32.gmra.mrb[4].mxu1 %vm1313_vm4, %v12132_v61 }
 0x295   :  { %10266 = vmatmul.mubr.msk.f32.vlgmr.msra.gmra.mrb[6].mxu0 %vm1313_vm4, %v12121_v56  ;;  %10271 = vmatprep.subr.mxu0 %v2016_v42 }
 0x296   :  { %10272 = vmatpush3.msra.mxu0 %v2016_v42  ;;  %10225 = vmatprep.mubr.f32.mxu1 %v12104_v37 }
 0x297   :  { %10279 = vmatprep.subr.mxu0 %v12174_v29  ;;  %10268 = vmatprep.mubr.msk.f32.mxu0 %vm1313_vm4, %v12124_v57 }
 0x298   :  { %10226 = vmatmul.mubr.f32.vlgmr.msra.gmra.mrb[2].mxu1 %v12134_v62 }
 0x299   :  { %10232 = vmatpush3.msra.mxu1 %v12162_v23  ;;  %10269 = vmatmul.mubr.msk.f32.gmra.mrb[8].mxu0 %vm1313_vm4, %v12132_v61 }
 0x29a   :  { %10239 = vmatprep.subr.mxu1 %v1439_v39  ;;  %10228 = vmatprep.mubr.f32.mxu1 %v12137_v0 }
 0x29b   :  { %10273 = vmatprep.mubr.f32.mxu0 %v12104_v37 }
 0x29c   :  { %10229 = vmatmul.mubr.f32.gmra.mrb[4].mxu1 %v12146_v3 }
 0x29d   :  { %10274 = vmatmul.mubr.f32.vlgmr.msra.gmra.mrb[6].mxu0 %v12134_v62  ;;  %10233 = vmatprep.mubr.f32.mxu1 %v12107_v38 }
 0x29e   :  { %10280 = vmatpush3.msra.mxu0 %v12174_v29  ;;  %10276 = vmatprep.mubr.f32.mxu0 %v12137_v0 }
 0x29f   :  { %10287 = vmatprep.subr.mxu0 %v2017_v44 }
 0x2a0   :  { %10234 = vmatmul.mubr.f32.vlgmr.msra.gmra.mrb[2].mxu1 %v12144_v2 }
 0x2a1   :  { %10240 = vmatpush3.msra.mxu1 %v1439_v39  ;;  %10277 = vmatmul.mubr.f32.gmra.mrb[8].mxu0 %v12146_v3 }
 0x2a2   :  { %10247 = vmatprep.subr.mxu1 %v12162_v23  ;;  %10236 = vmatprep.mubr.f32.mxu1 %v12151_v6 }
 0x2a3   :  { %10281 = vmatprep.mubr.f32.mxu0 %v12107_v38 }
 0x2a4   :  { %10237 = vmatmul.mubr.f32.gmra.mrb[4].mxu1 %v12156_v9 }
 0x2a5   :  { %10282 = vmatmul.mubr.f32.vlgmr.msra.gmra.mrb[6].mxu0 %v12144_v2  ;;  %10241 = vmatprep.mubr.msk.f32.mxu1 %vm1313_vm4, %v12100_v35 }
 0x2a6   :  { %10288 = vmatpush3.msra.mxu0 %v2017_v44  ;;  %10284 = vmatprep.mubr.f32.mxu0 %v12151_v6 }
 0x2a7   :  { %10295 = vmatprep.subr.mxu0 %v12174_v29 }
 0x2a8   :  { %10242 = vmatmul.mubr.msk.f32.vlgmr.msra.gmra.mrb[2].mxu1 %vm1313_vm4, %v12121_v56 }
 0x2a9   :  { %10248 = vmatpush3.msra.mxu1 %v12162_v23  ;;  %10285 = vmatmul.mubr.f32.gmra.mrb[8].mxu0 %v12156_v9 }
 0x2aa   :  { %10244 = vmatprep.mubr.msk.f32.mxu1 %vm1313_vm4, %v12124_v57  ;;  %10289 = vmatprep.mubr.msk.f32.mxu0 %vm1313_vm4, %v12100_v35 }
 0x2ab   :  { %10303 = vmatprep.subr.bf16.mxu1 %v11599_v47 }
 0x2ac   :  { %10245 = vmatmul.mubr.msk.f32.gmra.mrb[4].mxu1 %vm1313_vm4, %v12132_v61 }
 0x2ad   :  { %10290 = vmatmul.mubr.msk.f32.vlgmr.msra.gmra.mrb[6].mxu0 %vm1313_vm4, %v12121_v56  ;;  %10249 = vmatprep.mubr.msk.f32.mxu1 %vm1313_vm4, %v12100_v35 }
 0x2ae   :  { %10296 = vmatpush3.msra.mxu0 %v12174_v29  ;;  %10292 = vmatprep.mubr.msk.f32.mxu0 %vm1313_vm4, %v12124_v57 }
 0x2af   :  { %11119 = vmatprep.subr.bf16.mxu0 %v11804_v10 }
 0x2b0   :  { %10250 = vmatmul.mubr.msk.f32.vlgmr.msra.gmra.mrb[2].mxu1 %vm1313_vm4, %v12121_v56 }
 0x2b1   :  { %10293 = vmatmul.mubr.msk.f32.gmra.mrb[8].mxu0 %vm1313_vm4, %v12132_v61  ;;  %10252 = vmatprep.mubr.msk.f32.mxu1 %vm1313_vm4, %v12124_v57 }
 0x2b2   :  { %10297 = vmatprep.mubr.msk.f32.mxu0 %vm1313_vm4, %v12100_v35  ;;  %10304 = vmatpush3.bf16.msra.mxu1 %v11599_v47 }
 0x2b3   :  { %10305 = vmatprep.subr.bf16.mxu1 %v11600_v48 }
 0x2b4   :  { %10253 = vmatmul.mubr.msk.f32.gmra.mrb[4].mxu1 %vm1313_vm4, %v12132_v61 }
 0x2b5   :  { %10298 = vmatmul.mubr.msk.f32.vlgmr.msra.gmra.mrb[6].mxu0 %vm1313_vm4, %v12121_v56 }
 0x2b6   :  { %10300 = vmatprep.mubr.msk.f32.mxu0 %vm1313_vm4, %v12124_v57  ;;  %10306 = vmatpush3.bf16.msra.mxu1 %v11600_v48 }
 0x2b7   :  { %10307 = vmatprep.subr.bf16.mxu1 %v11601_v49 }
 0x2b9   :  { %10301 = vmatmul.mubr.msk.f32.gmra.mrb[8].mxu0 %vm1313_vm4, %v12132_v61 }
 0x2ba   :  { %10308 = vmatpush3.bf16.msra.mxu1 %v11601_v49  ;;  %10331 = vmatprep.mubr.msk.f32.mxu0 %vm11805_vm0, %v13019_v11 }
 0x2bb   :  { %10309 = vmatprep.subr.bf16.mxu1 %v11602_v50 }
 0x2be   :  { %10310 = vmatpush3.bf16.msra.mxu1 %v11602_v50 }
 0x2bf   :  { %10311 = vmatprep.subr.bf16.mxu1 %v11603_v51 }
 0x2c2   :  { %10312 = vmatpush3.bf16.msra.mxu1 %v11603_v51 }
 0x2c3   :  { %10313 = vmatprep.subr.bf16.mxu1 %v11604_v52 }
 0x2c6   :  { %10314 = vmatpush3.bf16.msra.mxu1 %v11604_v52 }
 0x2c7   :  { %10315 = vmatprep.subr.bf16.mxu1 %v11605_v53 }
 0x2ca   :  { %10316 = vmatpush3.bf16.msra.mxu1 %v11605_v53 }
 0x2cb   :  { %10317 = vmatprep.subr.bf16.mxu1 %v11606_v54 }
 0x2ce   :  { %10318 = vmatpush3.bf16.msra.mxu1 %v11606_v54 }
 0x2cf   :  { %11155 = vmatprep.subr.bf16.mxu1 %v11804_v10 }
 0x383   :  { %v10251_v55 = vpop.f32.mrb[2].mxu1 }
 0x384   :  { %v2484_v58 = vmul.f32 %v10251_v55, %v11976_v33  ;;  %v1883_v59 = vpop.f32.mrb[3].mxu1 }
 0x385   :  { %v2483_v60 = vmul.f32 %v1883_v59, %v11961_v24 }
 0x387   :  { %v10254_v63 = vpop.f32.mrb[4].mxu1 }
 0x388   :  { %v2486_v13 = vmul.f32 %v10254_v63, %v11966_v27  ;;  %v10299_v4 = vpop.f32.mrb[6].mxu0  ;;  %v1895_v5 = vpop.f32.mrb[5].mxu1 }
 0x389   :  { %v2488_v7 = vadd.f32 %v10299_v4, %v2484_v58  ;;  %v2485_v8 = vmul.f32 %v11956_v21, %v1895_v5  ;;  %v2461_v12 = vpop.f32.mrb[7].mxu0 }
 0x38a   :  { %v2487_v15 = vadd.f32 %v2483_v60, %v2461_v12 }
 0x38b   :  { %vm2492_vm9 = vcmp.ge.f32.partialorder %v2488_v7, 0.0  ;;  %v2496_v17 = vmul.f32 0.01, %v2488_v7 }
 0x38c   :  { %vm2491_vm10 = vcmp.ge.f32.partialorder %v2487_v15, 0.0  ;;  %v2495_v20 = vmul.f32 0.01, %v2487_v15  ;;  %v10302_v22 = vpop.f32.mrb[8].mxu0 }
 0x38d   :  { %v2490_v23 = vadd.f32 %v10302_v22, %v2486_v13  ;;  %v2473_v33 = vpop.f32.mrb[9].mxu0  ;;  %v2500_v26 = vsel %vm2492_vm9, %v2488_v7, %v2496_v17 }
 0x38e   :  { %v2489_v30 = vadd.f32 %v2485_v8, %v2473_v33  ;;  %v2499_v24 = vsel %vm2491_vm10, %v2487_v15, %v2495_v20 }
 0x38f   :  { %vm2494_vm11 = vcmp.ge.f32.partialorder %v2490_v23, 0.0  ;;  %v2498_v32 = vmul.f32 0.01, %v2490_v23  ;;  %v2503_v27 = vpack.c.bf16 %v2500_v26, %v2499_v24 }
 0x390   :  { %vm2493_vm12 = vcmp.ge.f32.partialorder %v2489_v30, 0.0  ;;  %v2497_v34 = vmul.f32 0.01, %v2489_v30 }
 0x391   :  { %v2502_v29 = vsel %vm2494_vm11, %v2490_v23, %v2498_v32  ;;  %10319 = vmatprep.mubr.bf16.mxu1 %v2503_v27 }
 0x392   :  { %v2501_v21 = vsel %vm2493_vm12, %v2489_v30, %v2497_v34 }
 0x393   :  { %v2504_v39 = vpack.c.bf16 %v2502_v29, %v2501_v21 }
 0x395   :  { %10320 = vmatmul.mubr.bf16.vlgmr.msra.gmra.mrb[8].mxu1 %v2504_v39 }
 0x396   :  { %10397 = vmatprep.mubr.msk.f32.mxu1 %vm11805_vm0, %v13019_v11 }
 0x468   :  { %v12269_v41 = vpop.f32.mrb[8].mxu1 }
 0x469   :  { %v2625_v42 = vand.u32 4294901760, %v12269_v41  ;;  %v3105_v43 = vmul.f32 %v12269_v41, %v12269_v41  ;;  %v12274_v44 = vpop.f32.mrb[9].mxu1 }
 0x46a   :  { %v2619_v45 = vand.u32 4294901760, %v12274_v44  ;;  %v3103_v46 = vmul.f32 %v12274_v44, %v12274_v44  ;;  %v12279_v47 = vpop.f32.mrb[10].mxu1 }
 0x46b   :  { %v12282_v48 = vsub.f32 %v12269_v41, %v2625_v42  ;;  %v3114_v49 = vand.u32 4294901760, %v3105_v43  ;;  %v2628_v50 = vand.u32 4294901760, %v12279_v47  ;;  %v3106_v51 = vmul.f32 %v12279_v47, %v12279_v47  ;;  %v12287_v52 = vpop.f32.mrb[11].mxu1 }
 0x46c   :  { %v12290_v53 = vsub.f32 %v12274_v44, %v2619_v45  ;;  %v3108_v54 = vand.u32 4294901760, %v3103_v46  ;;  %v2622_v55 = vand.u32 4294901760, %v12287_v52  ;;  %v3104_v58 = vmul.f32 %v12287_v52, %v12287_v52 }
 0x46d   :  { %v2714_v59 = vand.u32 4294901760, %v12282_v48  ;;  %v12296_v60 = vsub.f32 %v3105_v43, %v3114_v49  ;;  %v12299_v63 = vsub.f32 %v12279_v47, %v2628_v50  ;;  %v3117_v13 = vand.u32 4294901760, %v3106_v51 }
 0x46e   :  { %v2700_v4 = vand.u32 4294901760, %v12290_v53  ;;  %v12302_v5 = vsub.f32 %v3103_v46, %v3108_v54  ;;  %v12305_v7 = vsub.f32 %v12287_v52, %v2622_v55  ;;  %v3111_v8 = vand.u32 4294901760, %v3104_v58 }
 0x46f   :  { %v2721_v12 = vand.u32 4294901760, %v12299_v63  ;;  %v12308_v15 = vsub.f32 %v3106_v51, %v3117_v13  ;;  %v12310_v17 = vpack.c.bf16 %v2622_v55, %v2619_v45  ;;  %v12312_v20 = vpack.c.bf16 %v2628_v50, %v2625_v42 }
 0x470   :  { %v2707_v22 = vand.u32 4294901760, %v12305_v7  ;;  %v3195_v23 = vsub.f32 %v3104_v58, %v3111_v8  ;;  %v12315_v33 = vpack.c.bf16 %v3111_v8, %v3108_v54  ;;  %v12317_v26 = vpack.c.bf16 %v3117_v13, %v3114_v49 }
 0x471   :  { %11121 = vmatpush3.bf16.msra.mxu0 %v12310_v17  ;;  %v2701_v30 = vsub.f32 %v12290_v53, %v2700_v4  ;;  %v3189_v24 = vand.u32 4294901760, %v12302_v5  ;;  %v2715_v32 = vsub.f32 %v12282_v48, %v2714_v59  ;;  %v2722_v27 = vsub.f32 %v12299_v63, %v2721_v12 }
 0x472   :  { %11157 = vmatpush3.bf16.msra.mxu1 %v12315_v33  ;;  %11122 = vmatprep.subr.bf16.mxu0 %v11804_v10  ;;  %v2708_v34 = vsub.f32 %v12305_v7, %v2707_v22  ;;  %v3196_v29 = vand.u32 4294901760, %v3195_v23  ;;  %v3203_v21 = vand.u32 4294901760, %v12296_v60  ;;  %v3210_v39 = vand.u32 4294901760, %v12308_v15 }
 0x473   :  { %11158 = vmatprep.subr.bf16.mxu1 %v11804_v10  ;;  %v2702_v42 = vand.u32 4294901760, %v2701_v30  ;;  %v3190_v43 = vsub.f32 %v12302_v5, %v3189_v24  ;;  %v2716_v45 = vand.u32 4294901760, %v2715_v32  ;;  %v2723_v46 = vand.u32 4294901760, %v2722_v27 }
 0x474   :  { %v2709_v49 = vand.u32 4294901760, %v2708_v34  ;;  %v3197_v50 = vsub.f32 %v3195_v23, %v3196_v29  ;;  %v3204_v51 = vsub.f32 %v12296_v60, %v3203_v21  ;;  %v3211_v54 = vsub.f32 %v12308_v15, %v3210_v39 }
 0x475   :  { %11124 = vmatpush3.bf16.msra.mxu0 %v12312_v20  ;;  %v3191_v55 = vand.u32 4294901760, %v3190_v43  ;;  %v11129_v58 = vpack.c.bf16 %v2723_v46, %v2716_v45  ;;  %v11132_v13 = vpack.c.bf16 %v12305_v7, %v12290_v53  ;;  %v11168_v8 = vpack.c.bf16 %v3195_v23, %v12302_v5 }
 0x476   :  { %11160 = vmatpush3.bf16.msra.mxu1 %v12317_v26  ;;  %11125 = vmatprep.subr.bf16.mxu0 %v11804_v10  ;;  %v11126_v30 = vpack.c.bf16 %v2709_v49, %v2702_v42  ;;  %v3198_v32 = vand.u32 4294901760, %v3197_v50  ;;  %v3205_v27 = vand.u32 4294901760, %v3204_v51  ;;  %v3212_v34 = vand.u32 4294901760, %v3211_v54 }
 0x477   :  { %11161 = vmatprep.subr.bf16.mxu1 %v11804_v10  ;;  %v11135_v11 = vpack.c.bf16 %v12299_v63, %v12282_v48  ;;  %v11171_v43 = vpack.c.bf16 %v12308_v15, %v12296_v60  ;;  %v11144_v45 = vpack.c.bf16 %v2707_v22, %v2700_v4  ;;  %v11180_v53 = vpack.c.bf16 %v3196_v29, %v3189_v24 }
 0x478   :  { %10332 = vmatmul.mubr.f32.vlgmr.msra.gmra.mrb[10].mxu0 %v11968_v28  ;;  %v11162_v5 = vpack.c.bf16 %v3198_v32, %v3191_v55  ;;  %v11165_v7 = vpack.c.bf16 %v3212_v34, %v3205_v27  ;;  %v11147_v23 = vpack.c.bf16 %v2721_v12, %v2714_v59  ;;  %v11183_v46 = vpack.c.bf16 %v3210_v39, %v3203_v21 }
 0x479   :  { %11127 = vmatpush3.bf16.msra.mxu0 %v11126_v30  ;;  %10398 = vmatmul.mubr.f32.vlgmr.msra.gmra.mrb[6].mxu1 %v11968_v28  ;;  %v13022_v48 = vmov 0.0   ;;  %v3607_v24 = vsub.s32 5, %v11940_v14 }
 0x47a   :  { %11163 = vmatpush3.bf16.msra.mxu1 %v11162_v5  ;;  %11128 = vmatprep.subr.bf16.mxu0 %v11804_v10  ;;  %v11610_v5 = vld [vmem:[#allocation10 + $0x18] sm:$0xff]  }
 0x47b   :  { %11164 = vmatprep.subr.bf16.mxu1 %v11804_v10  ;;  %10342 = vmatprep.mubr.msk.f32.mxu0 %vm11805_vm0, %v13022_v48  ;;  %v3608_v39 = vrot.slane %v12141_v1, %v3607_v24 }
 0x47c   :  { %10408 = vmatprep.mubr.msk.f32.mxu1 %vm11805_vm0, %v13022_v48 }
 0x47d   :  { %11130 = vmatpush3.bf16.msra.mxu0 %v11129_v58 }
 0x47e   :  { %11166 = vmatpush3.bf16.msra.mxu1 %v11165_v7  ;;  %11131 = vmatprep.subr.bf16.mxu0 %v11804_v10  ;;  %v11611_v7 = vld [vmem:[#allocation10 + $0x20] sm:$0xff]  }
 0x47f   :  { %11167 = vmatprep.subr.bf16.mxu1 %v11804_v10 }
 0x480   :  { %10343 = vmatmul.mubr.msk.f32.vlgmr.msra.gmra.mrb[10].mxu0 %vm317_vm2, %v11945_v16 }
 0x481   :  { %11133 = vmatpush3.bf16.msra.mxu0 %v11132_v13  ;;  %10409 = vmatmul.mubr.msk.f32.vlgmr.msra.gmra.mrb[6].mxu1 %vm317_vm2, %v11945_v16 }
 0x482   :  { %11169 = vmatpush3.bf16.msra.mxu1 %v11168_v8  ;;  %11134 = vmatprep.subr.bf16.mxu0 %v11804_v10 }
 0x483   :  { %11170 = vmatprep.subr.bf16.mxu1 %v11804_v10  ;;  %10353 = vmatprep.mubr.msk.f32.mxu0 %vm11805_vm0, %v13022_v48 }
 0x484   :  { %10419 = vmatprep.mubr.msk.f32.mxu1 %vm11805_vm0, %v13022_v48 }
 0x485   :  { %11136 = vmatpush3.bf16.msra.mxu0 %v11135_v11 }
 0x486   :  { %11172 = vmatpush3.bf16.msra.mxu1 %v11171_v43  ;;  %11137 = vmatprep.subr.bf16.mxu0 %v11804_v10  ;;  %v11607_v43 = vld [vmem:[#allocation10] sm:$0xff]  }
 0x487   :  { %11173 = vmatprep.subr.bf16.mxu1 %v11804_v10 }
 0x488   :  { %10354 = vmatmul.mubr.f32.vlgmr.msra.gmra.mrb[10].mxu0 %v11949_v18 }
 0x489   :  { %11139 = vmatpush3.bf16.msra.mxu0 %v12310_v17  ;;  %10420 = vmatmul.mubr.f32.vlgmr.msra.gmra.mrb[6].mxu1 %v11949_v18 }
 0x48a   :  { %11175 = vmatpush3.bf16.msra.mxu1 %v12315_v33  ;;  %11140 = vmatprep.subr.bf16.mxu0 %v11804_v10 }
 0x48b   :  { %11176 = vmatprep.subr.bf16.mxu1 %v11804_v10  ;;  %10364 = vmatprep.mubr.msk.f32.mxu0 %vm11805_vm0, %v13022_v48 }
 0x48c   :  { %10430 = vmatprep.mubr.msk.f32.mxu1 %vm11805_vm0, %v13022_v48 }
 0x48d   :  { %11142 = vmatpush3.bf16.msra.mxu0 %v12312_v20 }
 0x48e   :  { %11178 = vmatpush3.bf16.msra.mxu1 %v12317_v26  ;;  %11143 = vmatprep.subr.bf16.mxu0 %v11804_v10 }
 0x48f   :  { %11179 = vmatprep.subr.bf16.mxu1 %v11804_v10 }
 0x490   :  { %10365 = vmatmul.mubr.f32.vlgmr.msra.gmra.mrb[10].mxu0 %v11952_v19 }
 0x491   :  { %11145 = vmatpush3.bf16.msra.mxu0 %v11144_v45  ;;  %10431 = vmatmul.mubr.f32.vlgmr.msra.gmra.mrb[6].mxu1 %v11952_v19  ;;  %v11608_v45 = vld [vmem:[#allocation10 + $0x8] sm:$0xff]  }
 0x492   :  { %11181 = vmatpush3.bf16.msra.mxu1 %v11180_v53  ;;  %11146 = vmatprep.subr.bf16.mxu0 %v11804_v10  ;;  %v11609_v53 = vld [vmem:[#allocation10 + $0x10] sm:$0xff]  }
 0x493   :  { %11182 = vmatprep.subr.bf16.mxu1 %v11804_v10  ;;  %10375 = vmatprep.mubr.msk.f32.mxu0 %vm11805_vm0, %v13022_v48 }
 0x494   :  { %10441 = vmatprep.mubr.msk.f32.mxu1 %vm11805_vm0, %v13022_v48 }
 0x495   :  { %11148 = vmatpush3.bf16.msra.mxu0 %v11147_v23  ;;  %v11612_v23 = vld [vmem:[#allocation10 + $0x28] sm:$0xff]  }
 0x496   :  { %11184 = vmatpush3.bf16.msra.mxu1 %v11183_v46  ;;  %11149 = vmatprep.subr.bf16.mxu0 %v11804_v10  ;;  %v11613_v46 = vld [vmem:[#allocation10 + $0x30] sm:$0xff]  }
 0x497   :  { %11185 = vmatprep.subr.bf16.mxu1 %v11804_v10 }
 0x498   :  { %10376 = vmatmul.mubr.msk.f32.vlgmr.msra.gmra.mrb[10].mxu0 %vm317_vm2, %v11945_v16 }
 0x499   :  { %11151 = vmatpush3.bf16.msra.mxu0 %v12310_v17  ;;  %10442 = vmatmul.mubr.msk.f32.vlgmr.msra.gmra.mrb[6].mxu1 %vm317_vm2, %v11945_v16 }
 0x49a   :  { %11187 = vmatpush3.bf16.msra.mxu1 %v12315_v33  ;;  %11152 = vmatprep.subr.bf16.mxu0 %v11804_v10  ;;  %v3601_v33 = vsub.s32 1, %v11940_v14 }
 0x49b   :  { %11188 = vmatprep.subr.bf16.mxu1 %v11804_v10  ;;  %10386 = vmatprep.mubr.msk.f32.mxu0 %vm11805_vm0, %v13022_v48 }
 0x49c   :  { %10452 = vmatprep.mubr.msk.f32.mxu1 %vm11805_vm0, %v13022_v48 }
 0x49d   :  { %11154 = vmatpush3.bf16.msra.mxu0 %v12312_v20 }
 0x49e   :  { %11190 = vmatpush3.bf16.msra.mxu1 %v12317_v26  ;;  %v3602_v26 = vrot.slane %v12141_v1, %v3601_v33 }
 0x4a0   :  { %10387 = vmatmul.mubr.msk.f32.vlgmr.msra.gmra.mrb[10].mxu0 %vm317_vm2, %v11945_v16 }
 0x4a1   :  { %10453 = vmatmul.mubr.msk.f32.vlgmr.msra.gmra.mrb[6].mxu1 %vm317_vm2, %v11945_v16  ;;  %10457 = vmatprep.mubr.f32.mxu0 %v12111_v40 }
 0x4a2   :  { %10505 = vmatprep.mubr.f32.mxu1 %v12111_v40 }
 0x573   :  { %v3099_v11 = vpop.f32.mrb[10].mxu0 }
 0x574   :  { %v3592_v59 = vmul.f32 0.125, %v3099_v11  ;;  %v10388_v60 = vpop.f32.mrb[11].mxu0  ;;  %v3588_v63 = vpop.f32.mrb[6].mxu1  ;;  %v11614_v11 = vld [vmem:[#allocation10 + $0x38] sm:$0xff]  }
 0x575   :  { %v3593_v4 = vmul.f32 0.125, %v3588_v63  ;;  %v10454_v12 = vpop.f32.mrb[7].mxu1 }
 0x576   :  { %v3594_v15 = vmul.f32 %v3592_v59, %v3592_v59 }
 0x578   :  { %v3595_v17 = vsub.f32 %v3593_v4, %v3594_v15 }
 0x57a   :  { %v3596_v20 = vmax.f32 %v3595_v17, 0.0 }
 0x57c   :  { %v3597_v22 = vadd.f32 1e-05, %v3596_v20 }
 0x57e   :  { %11625 = vrsqrt.f32 %v3597_v22 }
 0x588   :  { %v11626_v29 = vpop.eup %11625 }
 0x589   :  { %v3603_v21 = vmul.f32 %v11626_v29, %v3602_v26 }
 0x58b   :  { %v3604_v42 = vmul.f32 %v3603_v21, %v3592_v59  ;;  %v3611_v49 = vsel %vm1326_vm8, %v3603_v21, 0 }
 0x58c   :  { %v12415_v50 = vand.u32 4294901760, %v3611_v49 }
 0x58d   :  { %v3609_v51 = vsub.f32 %v3608_v39, %v3604_v42 }
 0x58e   :  { %10455 = vmatprep.subr.mxu0 %v12415_v50  ;;  %v3721_v54 = vsub.f32 %v3611_v49, %v12415_v50 }
 0x58f   :  { %v4189_v55 = vsel %vm1326_vm8, %v3609_v51, 0  ;;  %10456 = vmatpush3.msra.mxu0 %v12415_v50 }
 0x590   :  { %v12421_v58 = vand.u32 4294901760, %v4189_v55  ;;  %10458 = vmatmul.mubr.f32.vlgmr.msra.gmra.mrb[12].mxu0 %v12164_v25  ;;  %v3722_v13 = vand.u32 4294901760, %v3721_v54 }
 0x591   :  { %10460 = vmatprep.mubr.f32.mxu0 %v12168_v31 }
 0x592   :  { %10503 = vmatprep.subr.mxu1 %v12421_v58  ;;  %v3723_v1 = vsub.f32 %v3721_v54, %v3722_v13  ;;  %v4299_v8 = vsub.f32 %v4189_v55, %v12421_v58 }
 0x593   :  { %10504 = vmatpush3.msra.mxu1 %v12421_v58 }
 0x594   :  { %10461 = vmatmul.mubr.f32.gmra.mrb[14].mxu0 %v12177_v36  ;;  %10506 = vmatmul.mubr.f32.vlgmr.msra.gmra.mrb[12].mxu1 %v12164_v25  ;;  %v3724_v30 = vand.u32 4294901760, %v3723_v1  ;;  %v4300_v32 = vand.u32 4294901760, %v4299_v8 }
 0x595   :  { %10465 = vmatprep.mubr.msk.f32.mxu0 %vm1313_vm4, %v12100_v35  ;;  %10508 = vmatprep.mubr.f32.mxu1 %v12168_v31 }
 0x596   :  { %10463 = vmatprep.subr.mxu0 %v3724_v30  ;;  %v4301_v27 = vsub.f32 %v4299_v8, %v4300_v32 }
 0x597   :  { %10464 = vmatpush3.msra.mxu0 %v3724_v30 }
 0x598   :  { %10466 = vmatmul.mubr.msk.f32.vlgmr.msra.gmra.mrb[12].mxu0 %vm1313_vm4, %v12121_v56  ;;  %10471 = vmatprep.subr.mxu0 %v3721_v54  ;;  %v4302_v34 = vand.u32 4294901760, %v4301_v27 }
 0x599   :  { %10509 = vmatmul.mubr.f32.gmra.mrb[14].mxu1 %v12177_v36  ;;  %10472 = vmatpush3.msra.mxu0 %v3721_v54 }
 0x59a   :  { %10479 = vmatprep.subr.mxu0 %v12415_v50  ;;  %10511 = vmatprep.subr.mxu1 %v4302_v34 }
 0x59b   :  { %10468 = vmatprep.mubr.msk.f32.mxu0 %vm1313_vm4, %v12124_v57  ;;  %10512 = vmatpush3.msra.mxu1 %v4302_v34 }
 0x59c   :  { %10513 = vmatprep.mubr.msk.f32.mxu1 %vm1313_vm4, %v12100_v35  ;;  %10469 = vmatmul.mubr.msk.f32.gmra.mrb[14].mxu0 %vm1313_vm4, %v12132_v61 }
 0x59d   :  { %10514 = vmatmul.mubr.msk.f32.vlgmr.msra.gmra.mrb[12].mxu1 %vm1313_vm4, %v12121_v56  ;;  %10519 = vmatprep.subr.mxu1 %v4299_v8 }
 0x59e   :  { %10520 = vmatpush3.msra.mxu1 %v4299_v8  ;;  %10473 = vmatprep.mubr.f32.mxu0 %v12104_v37 }
 0x59f   :  { %10527 = vmatprep.subr.mxu1 %v12421_v58  ;;  %10516 = vmatprep.mubr.msk.f32.mxu1 %vm1313_vm4, %v12124_v57 }
 0x5a0   :  { %10474 = vmatmul.mubr.f32.vlgmr.msra.gmra.mrb[12].mxu0 %v12134_v62 }
 0x5a1   :  { %10480 = vmatpush3.msra.mxu0 %v12415_v50  ;;  %10517 = vmatmul.mubr.msk.f32.gmra.mrb[14].mxu1 %vm1313_vm4, %v12132_v61 }
 0x5a2   :  { %10487 = vmatprep.subr.mxu0 %v3722_v13  ;;  %10476 = vmatprep.mubr.f32.mxu0 %v12137_v0 }
 0x5a3   :  { %10521 = vmatprep.mubr.f32.mxu1 %v12104_v37 }
 0x5a4   :  { %10477 = vmatmul.mubr.f32.gmra.mrb[14].mxu0 %v12146_v3 }
 0x5a5   :  { %10522 = vmatmul.mubr.f32.vlgmr.msra.gmra.mrb[12].mxu1 %v12134_v62  ;;  %10481 = vmatprep.mubr.f32.mxu0 %v12107_v38 }
 0x5a6   :  { %10528 = vmatpush3.msra.mxu1 %v12421_v58  ;;  %10524 = vmatprep.mubr.f32.mxu1 %v12137_v0 }
 0x5a7   :  { %10535 = vmatprep.subr.mxu1 %v4300_v32 }
 0x5a8   :  { %10482 = vmatmul.mubr.f32.vlgmr.msra.gmra.mrb[12].mxu0 %v12144_v2 }
 0x5a9   :  { %10488 = vmatpush3.msra.mxu0 %v3722_v13  ;;  %10525 = vmatmul.mubr.f32.gmra.mrb[14].mxu1 %v12146_v3 }
 0x5aa   :  { %10495 = vmatprep.subr.mxu0 %v12415_v50  ;;  %10484 = vmatprep.mubr.f32.mxu0 %v12151_v6 }
 0x5ab   :  { %10529 = vmatprep.mubr.f32.mxu1 %v12107_v38 }
 0x5ac   :  { %10485 = vmatmul.mubr.f32.gmra.mrb[14].mxu0 %v12156_v9 }
 0x5ad   :  { %10530 = vmatmul.mubr.f32.vlgmr.msra.gmra.mrb[12].mxu1 %v12144_v2  ;;  %10489 = vmatprep.mubr.msk.f32.mxu0 %vm1313_vm4, %v12100_v35 }
 0x5ae   :  { %10536 = vmatpush3.msra.mxu1 %v4300_v32  ;;  %10532 = vmatprep.mubr.f32.mxu1 %v12151_v6 }
 0x5af   :  { %10543 = vmatprep.subr.mxu1 %v12421_v58 }
 0x5b0   :  { %10490 = vmatmul.mubr.msk.f32.vlgmr.msra.gmra.mrb[12].mxu0 %vm1313_vm4, %v12121_v56 }
 0x5b1   :  { %10496 = vmatpush3.msra.mxu0 %v12415_v50  ;;  %10533 = vmatmul.mubr.f32.gmra.mrb[14].mxu1 %v12156_v9 }
 0x5b2   :  { %10492 = vmatprep.mubr.msk.f32.mxu0 %vm1313_vm4, %v12124_v57  ;;  %10537 = vmatprep.mubr.msk.f32.mxu1 %vm1313_vm4, %v12100_v35 }
 0x5b3   :  { %10551 = vmatprep.subr.bf16.mxu0 %v11607_v43 }
 0x5b4   :  { %10493 = vmatmul.mubr.msk.f32.gmra.mrb[14].mxu0 %vm1313_vm4, %v12132_v61 }
 0x5b5   :  { %10538 = vmatmul.mubr.msk.f32.vlgmr.msra.gmra.mrb[12].mxu1 %vm1313_vm4, %v12121_v56  ;;  %10497 = vmatprep.mubr.msk.f32.mxu0 %vm1313_vm4, %v12100_v35 }
 0x5b6   :  { %10544 = vmatpush3.msra.mxu1 %v12421_v58  ;;  %10540 = vmatprep.mubr.msk.f32.mxu1 %vm1313_vm4, %v12124_v57 }
 0x5b7   :  { %11191 = vmatprep.subr.bf16.mxu1 %v11804_v10 }
 0x5b8   :  { %10498 = vmatmul.mubr.msk.f32.vlgmr.msra.gmra.mrb[12].mxu0 %vm1313_vm4, %v12121_v56 }
 0x5b9   :  { %10541 = vmatmul.mubr.msk.f32.gmra.mrb[14].mxu1 %vm1313_vm4, %v12132_v61  ;;  %10500 = vmatprep.mubr.msk.f32.mxu0 %vm1313_vm4, %v12124_v57 }
 0x5ba   :  { %10545 = vmatprep.mubr.msk.f32.mxu1 %vm1313_vm4, %v12100_v35  ;;  %10552 = vmatpush3.bf16.msra.mxu0 %v11607_v43 }
 0x5bb   :  { %10553 = vmatprep.subr.bf16.mxu0 %v11608_v45 }
 0x5bc   :  { %10501 = vmatmul.mubr.msk.f32.gmra.mrb[14].mxu0 %vm1313_vm4, %v12132_v61 }
 0x5bd   :  { %10546 = vmatmul.mubr.msk.f32.vlgmr.msra.gmra.mrb[12].mxu1 %vm1313_vm4, %v12121_v56 }
 0x5be   :  { %10548 = vmatprep.mubr.msk.f32.mxu1 %vm1313_vm4, %v12124_v57  ;;  %10554 = vmatpush3.bf16.msra.mxu0 %v11608_v45 }
 0x5bf   :  { %10555 = vmatprep.subr.bf16.mxu0 %v11609_v53 }
 0x5c1   :  { %10549 = vmatmul.mubr.msk.f32.gmra.mrb[14].mxu1 %vm1313_vm4, %v12132_v61 }
 0x5c2   :  { %10556 = vmatpush3.bf16.msra.mxu0 %v11609_v53  ;;  %10579 = vmatprep.mubr.msk.f32.mxu1 %vm11805_vm0, %v13022_v48 }
 0x5c3   :  { %10557 = vmatprep.subr.bf16.mxu0 %v11610_v5 }
 0x5c6   :  { %10558 = vmatpush3.bf16.msra.mxu0 %v11610_v5 }
 0x5c7   :  { %10559 = vmatprep.subr.bf16.mxu0 %v11611_v7 }
 0x5ca   :  { %10560 = vmatpush3.bf16.msra.mxu0 %v11611_v7 }
 0x5cb   :  { %10561 = vmatprep.subr.bf16.mxu0 %v11612_v23 }
 0x5ce   :  { %10562 = vmatpush3.bf16.msra.mxu0 %v11612_v23 }
 0x5cf   :  { %10563 = vmatprep.subr.bf16.mxu0 %v11613_v46 }
 0x5d2   :  { %10564 = vmatpush3.bf16.msra.mxu0 %v11613_v46 }
 0x5d3   :  { %10565 = vmatprep.subr.bf16.mxu0 %v11614_v11 }
 0x5d6   :  { %10566 = vmatpush3.bf16.msra.mxu0 %v11614_v11 }
 0x5d7   :  { %11227 = vmatprep.subr.bf16.mxu0 %v11804_v10 }
 0x68b   :  { %v10499_v59 = vpop.f32.mrb[12].mxu0 }
 0x68c   :  { %v4767_v60 = vmul.f32 %v10499_v59, %v12287_v52  ;;  %v4166_v63 = vpop.f32.mrb[13].mxu0 }
 0x68d   :  { %v4766_v4 = vmul.f32 %v4166_v63, %v12274_v44 }
 0x68f   :  { %v10502_v12 = vpop.f32.mrb[14].mxu0 }
 0x690   :  { %v4769_v15 = vmul.f32 %v10502_v12, %v12279_v47  ;;  %v10547_v17 = vpop.f32.mrb[12].mxu1  ;;  %v4178_v20 = vpop.f32.mrb[15].mxu0 }
 0x691   :  { %v4771_v22 = vadd.f32 %v10547_v17, %v4767_v60  ;;  %v4768_v33 = vmul.f32 %v12269_v41, %v4178_v20  ;;  %v4744_v26 = vpop.f32.mrb[13].mxu1 }
 0x692   :  { %v4770_v24 = vadd.f32 %v4766_v4, %v4744_v26 }
 0x693   :  { %vm4775_vm13 = vcmp.ge.f32.partialorder %v4771_v22, 0.0  ;;  %v4779_v29 = vmul.f32 0.01, %v4771_v22 }
 0x694   :  { %vm4774_vm14 = vcmp.ge.f32.partialorder %v4770_v24, 0.0  ;;  %v4778_v21 = vmul.f32 0.01, %v4770_v24  ;;  %v10550_v39 = vpop.f32.mrb[14].mxu1 }
 0x695   :  { %v4773_v42 = vadd.f32 %v10550_v39, %v4769_v15  ;;  %v4756_v52 = vpop.f32.mrb[15].mxu1  ;;  %v4783_v49 = vsel %vm4775_vm13, %v4771_v22, %v4779_v29 }
 0x696   :  { %v4772_v50 = vadd.f32 %v4768_v33, %v4756_v52  ;;  %v4782_v44 = vsel %vm4774_vm14, %v4770_v24, %v4778_v21 }
 0x697   :  { %vm4777_vm15 = vcmp.ge.f32.partialorder %v4773_v42, 0.0  ;;  %v4781_v51 = vmul.f32 0.01, %v4773_v42  ;;  %v4786_v47 = vpack.c.bf16 %v4783_v49, %v4782_v44 }
 0x698   :  { %vm4776_vm1 = vcmp.ge.f32.partialorder %v4772_v50, 0.0  ;;  %v4780_v54 = vmul.f32 0.01, %v4772_v50 }
 0x699   :  { %v4785_v55 = vsel %vm4777_vm15, %v4773_v42, %v4781_v51  ;;  %10567 = vmatprep.mubr.bf16.mxu0 %v4786_v47 }
 0x69a   :  { %v4784_v41 = vsel %vm4776_vm1, %v4772_v50, %v4780_v54 }
 0x69b   :  { %v4787_v58 = vpack.c.bf16 %v4785_v55, %v4784_v41 }
 0x69d   :  { %10568 = vmatmul.mubr.bf16.vlgmr.msra.gmra.mrb[16].mxu0 %v4787_v58 }
 0x69e   :  { %10645 = vmatprep.mubr.msk.f32.mxu0 %vm11805_vm0, %v13022_v48 }
 0x770   :  { %v12514_v13 = vpop.f32.mrb[16].mxu0 }
 0x771   :  { %v4908_v1 = vand.u32 4294901760, %v12514_v13  ;;  %v5388_v8 = vmul.f32 %v12514_v13, %v12514_v13  ;;  %v12519_v30 = vpop.f32.mrb[17].mxu0 }
 0x772   :  { %v4902_v32 = vand.u32 4294901760, %v12519_v30  ;;  %v5386_v27 = vmul.f32 %v12519_v30, %v12519_v30  ;;  %v12524_v34 = vpop.f32.mrb[18].mxu0 }
 0x773   :  { %v12527_v43 = vsub.f32 %v12514_v13, %v4908_v1  ;;  %v5397_v45 = vand.u32 4294901760, %v5388_v8  ;;  %v4911_v53 = vand.u32 4294901760, %v12524_v34  ;;  %v5389_v5 = vmul.f32 %v12524_v34, %v12524_v34  ;;  %v12532_v7 = vpop.f32.mrb[19].mxu0 }
 0x774   :  { %v12535_v23 = vsub.f32 %v12519_v30, %v4902_v32  ;;  %v5391_v46 = vand.u32 4294901760, %v5386_v27  ;;  %v4905_v11 = vand.u32 4294901760, %v12532_v7  ;;  %v5387_v59 = vmul.f32 %v12532_v7, %v12532_v7 }
 0x775   :  { %v4997_v60 = vand.u32 4294901760, %v12527_v43  ;;  %v12541_v63 = vsub.f32 %v5388_v8, %v5397_v45  ;;  %v12544_v4 = vsub.f32 %v12524_v34, %v4911_v53  ;;  %v5400_v12 = vand.u32 4294901760, %v5389_v5 }
 0x776   :  { %v4983_v15 = vand.u32 4294901760, %v12535_v23  ;;  %v12547_v17 = vsub.f32 %v5386_v27, %v5391_v46  ;;  %v12550_v20 = vsub.f32 %v12532_v7, %v4905_v11  ;;  %v5394_v22 = vand.u32 4294901760, %v5387_v59 }
 0x777   :  { %v5004_v33 = vand.u32 4294901760, %v12544_v4  ;;  %v12553_v26 = vsub.f32 %v5389_v5, %v5400_v12  ;;  %v12555_v24 = vpack.c.bf16 %v4905_v11, %v4902_v32  ;;  %v12557_v29 = vpack.c.bf16 %v4911_v53, %v4908_v1 }
 0x778   :  { %v4990_v21 = vand.u32 4294901760, %v12550_v20  ;;  %v5478_v39 = vsub.f32 %v5387_v59, %v5394_v22  ;;  %v12560_v42 = vpack.c.bf16 %v5394_v22, %v5391_v46  ;;  %v12562_v52 = vpack.c.bf16 %v5400_v12, %v5397_v45 }
 0x779   :  { %11193 = vmatpush3.bf16.msra.mxu1 %v12555_v24  ;;  %v4984_v49 = vsub.f32 %v12535_v23, %v4983_v15  ;;  %v5472_v50 = vand.u32 4294901760, %v12547_v17  ;;  %v4998_v44 = vsub.f32 %v12527_v43, %v4997_v60  ;;  %v5005_v51 = vsub.f32 %v12544_v4, %v5004_v33 }
 0x77a   :  { %11229 = vmatpush3.bf16.msra.mxu0 %v12560_v42  ;;  %11194 = vmatprep.subr.bf16.mxu1 %v11804_v10  ;;  %v4991_v47 = vsub.f32 %v12550_v20, %v4990_v21  ;;  %v5479_v54 = vand.u32 4294901760, %v5478_v39  ;;  %v5486_v55 = vand.u32 4294901760, %v12541_v63  ;;  %v5493_v41 = vand.u32 4294901760, %v12553_v26 }
 0x77b   :  { %11230 = vmatprep.subr.bf16.mxu0 %v11804_v10  ;;  %v4985_v58 = vand.u32 4294901760, %v4984_v49  ;;  %v5473_v1 = vsub.f32 %v12547_v17, %v5472_v50  ;;  %v4999_v8 = vand.u32 4294901760, %v4998_v44  ;;  %v5006_v32 = vand.u32 4294901760, %v5005_v51 }
 0x77c   :  { %v4992_v27 = vand.u32 4294901760, %v4991_v47  ;;  %v5480_v45 = vsub.f32 %v5478_v39, %v5479_v54  ;;  %v5487_v53 = vsub.f32 %v12541_v63, %v5486_v55  ;;  %v5494_v5 = vsub.f32 %v12553_v26, %v5493_v41 }
 0x77d   :  { %11196 = vmatpush3.bf16.msra.mxu1 %v12557_v29  ;;  %v5474_v46 = vand.u32 4294901760, %v5473_v1  ;;  %v11201_v11 = vpack.c.bf16 %v5006_v32, %v4999_v8  ;;  %v11204_v59 = vpack.c.bf16 %v12550_v20, %v12535_v23  ;;  %v11240_v12 = vpack.c.bf16 %v5478_v39, %v12547_v17 }
 0x77e   :  { %11232 = vmatpush3.bf16.msra.mxu0 %v12562_v52  ;;  %11197 = vmatprep.subr.bf16.mxu1 %v11804_v10  ;;  %v11198_v22 = vpack.c.bf16 %v4992_v27, %v4985_v58  ;;  %v5481_v49 = vand.u32 4294901760, %v5480_v45  ;;  %v5488_v44 = vand.u32 4294901760, %v5487_v53  ;;  %v5495_v51 = vand.u32 4294901760, %v5494_v5 }
 0x77f   :  { %11233 = vmatprep.subr.bf16.mxu0 %v11804_v10  ;;  %v11207_v47 = vpack.c.bf16 %v12544_v4, %v12527_v43  ;;  %v11243_v1 = vpack.c.bf16 %v12553_v26, %v12541_v63  ;;  %v11216_v8 = vpack.c.bf16 %v4990_v21, %v4983_v15  ;;  %v11252_v23 = vpack.c.bf16 %v5479_v54, %v5472_v50 }
 0x780   :  { %10580 = vmatmul.mubr.f32.vlgmr.msra.gmra.mrb[16].mxu1 %v11968_v28  ;;  %v11234_v17 = vpack.c.bf16 %v5481_v49, %v5474_v46  ;;  %v11237_v20 = vpack.c.bf16 %v5495_v51, %v5488_v44  ;;  %v11219_v39 = vpack.c.bf16 %v5004_v33, %v4997_v60  ;;  %v11255_v32 = vpack.c.bf16 %v5493_v41, %v5486_v55 }
 0x781   :  { %11199 = vmatpush3.bf16.msra.mxu1 %v11198_v22  ;;  %10646 = vmatmul.mubr.f32.vlgmr.msra.gmra.mrb[20].mxu0 %v11968_v28  ;;  %v5890_v54 = vsub.s32 6, %v11940_v14 }
 0x782   :  { %11235 = vmatpush3.bf16.msra.mxu0 %v11234_v17  ;;  %11200 = vmatprep.subr.bf16.mxu1 %v11804_v10  ;;  %v11617_v17 = vld [vmem:[#allocation11 + $0x10] sm:$0xff]  }
 0x783   :  { %11236 = vmatprep.subr.bf16.mxu0 %v11804_v10  ;;  %10590 = vmatprep.mubr.msk.f32.mxu1 %vm11805_vm0, %v13022_v48 }
 0x784   :  { %10656 = vmatprep.mubr.msk.f32.mxu0 %vm11805_vm0, %v13022_v48 }
 0x785   :  { %11202 = vmatpush3.bf16.msra.mxu1 %v11201_v11 }
 0x786   :  { %11238 = vmatpush3.bf16.msra.mxu0 %v11237_v20  ;;  %11203 = vmatprep.subr.bf16.mxu1 %v11804_v10  ;;  %v11618_v20 = vld [vmem:[#allocation11 + $0x18] sm:$0xff]  }
 0x787   :  { %11239 = vmatprep.subr.bf16.mxu0 %v11804_v10 }
 0x788   :  { %10591 = vmatmul.mubr.msk.f32.vlgmr.msra.gmra.mrb[16].mxu1 %vm317_vm2, %v11945_v16 }
 0x789   :  { %11205 = vmatpush3.bf16.msra.mxu1 %v11204_v59  ;;  %10657 = vmatmul.mubr.msk.f32.vlgmr.msra.gmra.mrb[20].mxu0 %vm317_vm2, %v11945_v16 }
 0x78a   :  { %11241 = vmatpush3.bf16.msra.mxu0 %v11240_v12  ;;  %11206 = vmatprep.subr.bf16.mxu1 %v11804_v10 }
 0x78b   :  { %11242 = vmatprep.subr.bf16.mxu0 %v11804_v10  ;;  %10601 = vmatprep.mubr.msk.f32.mxu1 %vm11805_vm0, %v13022_v48 }
 0x78c   :  { %10667 = vmatprep.mubr.msk.f32.mxu0 %vm11805_vm0, %v13022_v48 }
 0x78d   :  { %11208 = vmatpush3.bf16.msra.mxu1 %v11207_v47 }
 0x78e   :  { %11244 = vmatpush3.bf16.msra.mxu0 %v11243_v1  ;;  %11209 = vmatprep.subr.bf16.mxu1 %v11804_v10 }
 0x78f   :  { %11245 = vmatprep.subr.bf16.mxu0 %v11804_v10 }
 0x790   :  { %10602 = vmatmul.mubr.f32.vlgmr.msra.gmra.mrb[16].mxu1 %v11949_v18 }
 0x791   :  { %11211 = vmatpush3.bf16.msra.mxu1 %v12555_v24  ;;  %10668 = vmatmul.mubr.f32.vlgmr.msra.gmra.mrb[20].mxu0 %v11949_v18 }
 0x792   :  { %11247 = vmatpush3.bf16.msra.mxu0 %v12560_v42  ;;  %11212 = vmatprep.subr.bf16.mxu1 %v11804_v10 }
 0x793   :  { %11248 = vmatprep.subr.bf16.mxu0 %v11804_v10  ;;  %10612 = vmatprep.mubr.msk.f32.mxu1 %vm11805_vm0, %v13022_v48 }
 0x794   :  { %10678 = vmatprep.mubr.msk.f32.mxu0 %vm11805_vm0, %v13022_v48 }
 0x795   :  { %11214 = vmatpush3.bf16.msra.mxu1 %v12557_v29 }
 0x796   :  { %11250 = vmatpush3.bf16.msra.mxu0 %v12562_v52  ;;  %11215 = vmatprep.subr.bf16.mxu1 %v11804_v10 }
 0x797   :  { %11251 = vmatprep.subr.bf16.mxu0 %v11804_v10 }
 0x798   :  { %10613 = vmatmul.mubr.f32.vlgmr.msra.gmra.mrb[16].mxu1 %v11952_v19 }
 0x799   :  { %11217 = vmatpush3.bf16.msra.mxu1 %v11216_v8  ;;  %10679 = vmatmul.mubr.f32.vlgmr.msra.gmra.mrb[20].mxu0 %v11952_v19  ;;  %v11615_v8 = vld [vmem:[#allocation11] sm:$0xff]  }
 0x79a   :  { %11253 = vmatpush3.bf16.msra.mxu0 %v11252_v23  ;;  %11218 = vmatprep.subr.bf16.mxu1 %v11804_v10  ;;  %v11616_v23 = vld [vmem:[#allocation11 + $0x8] sm:$0xff]  }
 0x79b   :  { %11254 = vmatprep.subr.bf16.mxu0 %v11804_v10  ;;  %10623 = vmatprep.mubr.msk.f32.mxu1 %vm11805_vm0, %v13022_v48 }
 0x79c   :  { %10689 = vmatprep.mubr.msk.f32.mxu0 %vm11805_vm0, %v13022_v48 }
 0x79d   :  { %11220 = vmatpush3.bf16.msra.mxu1 %v11219_v39  ;;  %v11619_v39 = vld [vmem:[#allocation11 + $0x20] sm:$0xff]  }
 0x79e   :  { %11256 = vmatpush3.bf16.msra.mxu0 %v11255_v32  ;;  %11221 = vmatprep.subr.bf16.mxu1 %v11804_v10  ;;  %v11620_v32 = vld [vmem:[#allocation11 + $0x28] sm:$0xff]  }
 0x79f   :  { %11257 = vmatprep.subr.bf16.mxu0 %v11804_v10 }
 0x7a0   :  { %10624 = vmatmul.mubr.msk.f32.vlgmr.msra.gmra.mrb[16].mxu1 %vm317_vm2, %v11945_v16 }
 0x7a1   :  { %11223 = vmatpush3.bf16.msra.mxu1 %v12555_v24  ;;  %10690 = vmatmul.mubr.msk.f32.vlgmr.msra.gmra.mrb[20].mxu0 %vm317_vm2, %v11945_v16 }
 0x7a2   :  { %11259 = vmatpush3.bf16.msra.mxu0 %v12560_v42  ;;  %11224 = vmatprep.subr.bf16.mxu1 %v11804_v10  ;;  %v5884_v42 = vsub.s32 2, %v11940_v14 }
 0x7a3   :  { %11260 = vmatprep.subr.bf16.mxu0 %v11804_v10  ;;  %10634 = vmatprep.mubr.msk.f32.mxu1 %vm11805_vm0, %v13022_v48 }
 0x7a4   :  { %10700 = vmatprep.mubr.msk.f32.mxu0 %vm11805_vm0, %v13022_v48 }
 0x7a5   :  { %11226 = vmatpush3.bf16.msra.mxu1 %v12557_v29 }
 0x7a6   :  { %11262 = vmatpush3.bf16.msra.mxu0 %v12562_v52  ;;  %v12656_v52 = vld [vmem:[#allocation5] sm:$0xff] }
 0x7a7   :  { %v5885_v50 = vrot.slane %v12656_v52, %v5884_v42  ;;  %v5891_v58 = vrot.slane %v12656_v52, %v5890_v54 }
 0x7a8   :  { %10635 = vmatmul.mubr.msk.f32.vlgmr.msra.gmra.mrb[16].mxu1 %vm317_vm2, %v11945_v16 }
 0x7a9   :  { %10701 = vmatmul.mubr.msk.f32.vlgmr.msra.gmra.mrb[20].mxu0 %vm317_vm2, %v11945_v16  ;;  %10705 = vmatprep.mubr.f32.mxu1 %v12111_v40 }
 0x7aa   :  { %10753 = vmatprep.mubr.f32.mxu0 %v12111_v40 }
 0x87b   :  { %v5382_v43 = vpop.f32.mrb[16].mxu1 }
 0x87c   :  { %v5875_v60 = vmul.f32 0.125, %v5382_v43  ;;  %v10636_v63 = vpop.f32.mrb[17].mxu1  ;;  %v5871_v4 = vpop.f32.mrb[20].mxu0  ;;  %v11621_v43 = vld [vmem:[#allocation11 + $0x30] sm:$0xff]  }
 0x87d   :  { %v5876_v15 = vmul.f32 0.125, %v5871_v4  ;;  %v10702_v33 = vpop.f32.mrb[21].mxu0 }
 0x87e   :  { %v5877_v26 = vmul.f32 %v5875_v60, %v5875_v60 }
 0x880   :  { %v5878_v24 = vsub.f32 %v5876_v15, %v5877_v26 }
 0x882   :  { %v5879_v29 = vmax.f32 %v5878_v24, 0.0 }
 0x884   :  { %v5880_v21 = vadd.f32 1e-05, %v5879_v29 }
 0x886   :  { %11627 = vrsqrt.f32 %v5880_v21 }
 0x890   :  { %v11628_v55 = vpop.eup %11627 }
 0x891   :  { %v5886_v41 = vmul.f32 %v11628_v55, %v5885_v50 }
 0x893   :  { %v5887_v27 = vmul.f32 %v5886_v41, %v5875_v60  ;;  %v5894_v45 = vsel %vm1326_vm8, %v5886_v41, 0  ;;  %v11622_v60 = vld [vmem:[#allocation11 + $0x38] sm:$0xff]  }
 0x894   :  { %v12662_v53 = vand.u32 4294901760, %v5894_v45 }
 0x895   :  { %v5892_v5 = vsub.f32 %v5891_v58, %v5887_v27 }
 0x896   :  { %10703 = vmatprep.subr.mxu1 %v12662_v53  ;;  %v6004_v46 = vsub.f32 %v5894_v45, %v12662_v53 }
 0x897   :  { %v6472_v11 = vsel %vm1326_vm8, %v5892_v5, 0  ;;  %10704 = vmatpush3.msra.mxu1 %v12662_v53 }
 0x898   :  { %v12668_v59 = vand.u32 4294901760, %v6472_v11  ;;  %10706 = vmatmul.mubr.f32.vlgmr.msra.gmra.mrb[18].mxu1 %v12164_v25  ;;  %v6005_v12 = vand.u32 4294901760, %v6004_v46 }
 0x899   :  { %10708 = vmatprep.mubr.f32.mxu1 %v12168_v31 }
 0x89a   :  { %10751 = vmatprep.subr.mxu0 %v12668_v59  ;;  %v6006_v22 = vsub.f32 %v6004_v46, %v6005_v12  ;;  %v6582_v49 = vsub.f32 %v6472_v11, %v12668_v59 }
 0x89b   :  { %10752 = vmatpush3.msra.mxu0 %v12668_v59 }
 0x89c   :  { %10709 = vmatmul.mubr.f32.gmra.mrb[20].mxu1 %v12177_v36  ;;  %10754 = vmatmul.mubr.f32.vlgmr.msra.gmra.mrb[22].mxu0 %v12164_v25  ;;  %v6007_v44 = vand.u32 4294901760, %v6006_v22  ;;  %v6583_v51 = vand.u32 4294901760, %v6582_v49 }
 0x89d   :  { %10713 = vmatprep.mubr.msk.f32.mxu1 %vm1313_vm4, %v12100_v35  ;;  %10756 = vmatprep.mubr.f32.mxu0 %v12168_v31 }
 0x89e   :  { %10711 = vmatprep.subr.mxu1 %v6007_v44  ;;  %v6584_v47 = vsub.f32 %v6582_v49, %v6583_v51 }
 0x89f   :  { %10712 = vmatpush3.msra.mxu1 %v6007_v44 }
 0x8a0   :  { %10714 = vmatmul.mubr.msk.f32.vlgmr.msra.gmra.mrb[18].mxu1 %vm1313_vm4, %v12121_v56  ;;  %10719 = vmatprep.subr.mxu1 %v6004_v46  ;;  %v6585_v1 = vand.u32 4294901760, %v6584_v47 }
 0x8a1   :  { %10757 = vmatmul.mubr.f32.gmra.mrb[24].mxu0 %v12177_v36  ;;  %10720 = vmatpush3.msra.mxu1 %v6004_v46 }
 0x8a2   :  { %10727 = vmatprep.subr.mxu1 %v12662_v53  ;;  %10759 = vmatprep.subr.mxu0 %v6585_v1 }
 0x8a3   :  { %10716 = vmatprep.mubr.msk.f32.mxu1 %vm1313_vm4, %v12124_v57  ;;  %10760 = vmatpush3.msra.mxu0 %v6585_v1 }
 0x8a4   :  { %10761 = vmatprep.mubr.msk.f32.mxu0 %vm1313_vm4, %v12100_v35  ;;  %10717 = vmatmul.mubr.msk.f32.gmra.mrb[20].mxu1 %vm1313_vm4, %v12132_v61 }
 0x8a5   :  { %10762 = vmatmul.mubr.msk.f32.vlgmr.msra.gmra.mrb[22].mxu0 %vm1313_vm4, %v12121_v56  ;;  %10767 = vmatprep.subr.mxu0 %v6582_v49 }
 0x8a6   :  { %10768 = vmatpush3.msra.mxu0 %v6582_v49  ;;  %10721 = vmatprep.mubr.f32.mxu1 %v12104_v37 }
 0x8a7   :  { %10775 = vmatprep.subr.mxu0 %v12668_v59  ;;  %10764 = vmatprep.mubr.msk.f32.mxu0 %vm1313_vm4, %v12124_v57 }
 0x8a8   :  { %10722 = vmatmul.mubr.f32.vlgmr.msra.gmra.mrb[18].mxu1 %v12134_v62 }
 0x8a9   :  { %10728 = vmatpush3.msra.mxu1 %v12662_v53  ;;  %10765 = vmatmul.mubr.msk.f32.gmra.mrb[24].mxu0 %vm1313_vm4, %v12132_v61 }
 0x8aa   :  { %10735 = vmatprep.subr.mxu1 %v6005_v12  ;;  %10724 = vmatprep.mubr.f32.mxu1 %v12137_v0 }
 0x8ab   :  { %10769 = vmatprep.mubr.f32.mxu0 %v12104_v37 }
 0x8ac   :  { %10725 = vmatmul.mubr.f32.gmra.mrb[20].mxu1 %v12146_v3 }
 0x8ad   :  { %10770 = vmatmul.mubr.f32.vlgmr.msra.gmra.mrb[22].mxu0 %v12134_v62  ;;  %10729 = vmatprep.mubr.f32.mxu1 %v12107_v38 }
 0x8ae   :  { %10776 = vmatpush3.msra.mxu0 %v12668_v59  ;;  %10772 = vmatprep.mubr.f32.mxu0 %v12137_v0 }
 0x8af   :  { %10783 = vmatprep.subr.mxu0 %v6583_v51 }
 0x8b0   :  { %10730 = vmatmul.mubr.f32.vlgmr.msra.gmra.mrb[18].mxu1 %v12144_v2 }
 0x8b1   :  { %10736 = vmatpush3.msra.mxu1 %v6005_v12  ;;  %10773 = vmatmul.mubr.f32.gmra.mrb[24].mxu0 %v12146_v3 }
 0x8b2   :  { %10743 = vmatprep.subr.mxu1 %v12662_v53  ;;  %10732 = vmatprep.mubr.f32.mxu1 %v12151_v6 }
 0x8b3   :  { %10777 = vmatprep.mubr.f32.mxu0 %v12107_v38 }
 0x8b4   :  { %10733 = vmatmul.mubr.f32.gmra.mrb[20].mxu1 %v12156_v9 }
 0x8b5   :  { %10778 = vmatmul.mubr.f32.vlgmr.msra.gmra.mrb[22].mxu0 %v12144_v2  ;;  %10737 = vmatprep.mubr.msk.f32.mxu1 %vm1313_vm4, %v12100_v35 }
 0x8b6   :  { %10784 = vmatpush3.msra.mxu0 %v6583_v51  ;;  %10780 = vmatprep.mubr.f32.mxu0 %v12151_v6 }
 0x8b7   :  { %10791 = vmatprep.subr.mxu0 %v12668_v59 }
 0x8b8   :  { %10738 = vmatmul.mubr.msk.f32.vlgmr.msra.gmra.mrb[18].mxu1 %vm1313_vm4, %v12121_v56 }
 0x8b9   :  { %10744 = vmatpush3.msra.mxu1 %v12662_v53  ;;  %10781 = vmatmul.mubr.f32.gmra.mrb[24].mxu0 %v12156_v9 }
 0x8ba   :  { %10740 = vmatprep.mubr.msk.f32.mxu1 %vm1313_vm4, %v12124_v57  ;;  %10785 = vmatprep.mubr.msk.f32.mxu0 %vm1313_vm4, %v12100_v35 }
 0x8bb   :  { %10799 = vmatprep.subr.bf16.mxu1 %v11615_v8 }
 0x8bc   :  { %10741 = vmatmul.mubr.msk.f32.gmra.mrb[20].mxu1 %vm1313_vm4, %v12132_v61 }
 0x8bd   :  { %10786 = vmatmul.mubr.msk.f32.vlgmr.msra.gmra.mrb[22].mxu0 %vm1313_vm4, %v12121_v56  ;;  %10745 = vmatprep.mubr.msk.f32.mxu1 %vm1313_vm4, %v12100_v35 }
 0x8be   :  { %10792 = vmatpush3.msra.mxu0 %v12668_v59  ;;  %10788 = vmatprep.mubr.msk.f32.mxu0 %vm1313_vm4, %v12124_v57 }
 0x8bf   :  { %11263 = vmatprep.subr.bf16.mxu0 %v11804_v10 }
 0x8c0   :  { %10746 = vmatmul.mubr.msk.f32.vlgmr.msra.gmra.mrb[18].mxu1 %vm1313_vm4, %v12121_v56 }
 0x8c1   :  { %10789 = vmatmul.mubr.msk.f32.gmra.mrb[24].mxu0 %vm1313_vm4, %v12132_v61  ;;  %10748 = vmatprep.mubr.msk.f32.mxu1 %vm1313_vm4, %v12124_v57 }
 0x8c2   :  { %10793 = vmatprep.mubr.msk.f32.mxu0 %vm1313_vm4, %v12100_v35  ;;  %10800 = vmatpush3.bf16.msra.mxu1 %v11615_v8 }
 0x8c3   :  { %10801 = vmatprep.subr.bf16.mxu1 %v11616_v23 }
 0x8c4   :  { %10749 = vmatmul.mubr.msk.f32.gmra.mrb[20].mxu1 %vm1313_vm4, %v12132_v61 }
 0x8c5   :  { %10794 = vmatmul.mubr.msk.f32.vlgmr.msra.gmra.mrb[22].mxu0 %vm1313_vm4, %v12121_v56 }
 0x8c6   :  { %10796 = vmatprep.mubr.msk.f32.mxu0 %vm1313_vm4, %v12124_v57  ;;  %10802 = vmatpush3.bf16.msra.mxu1 %v11616_v23 }
 0x8c7   :  { %10803 = vmatprep.subr.bf16.mxu1 %v11617_v17 }
 0x8c9   :  { %10797 = vmatmul.mubr.msk.f32.gmra.mrb[24].mxu0 %vm1313_vm4, %v12132_v61 }
 0x8ca   :  { %10804 = vmatpush3.bf16.msra.mxu1 %v11617_v17  ;;  %10827 = vmatprep.mubr.msk.f32.mxu0 %vm11805_vm0, %v13022_v48 }
 0x8cb   :  { %10805 = vmatprep.subr.bf16.mxu1 %v11618_v20 }
 0x8ce   :  { %10806 = vmatpush3.bf16.msra.mxu1 %v11618_v20 }
 0x8cf   :  { %10807 = vmatprep.subr.bf16.mxu1 %v11619_v39 }
 0x8d2   :  { %10808 = vmatpush3.bf16.msra.mxu1 %v11619_v39 }
 0x8d3   :  { %10809 = vmatprep.subr.bf16.mxu1 %v11620_v32 }
 0x8d6   :  { %10810 = vmatpush3.bf16.msra.mxu1 %v11620_v32 }
 0x8d7   :  { %10811 = vmatprep.subr.bf16.mxu1 %v11621_v43 }
 0x8da   :  { %10812 = vmatpush3.bf16.msra.mxu1 %v11621_v43 }
 0x8db   :  { %10813 = vmatprep.subr.bf16.mxu1 %v11622_v60 }
 0x8de   :  { %10814 = vmatpush3.bf16.msra.mxu1 %v11622_v60 }
 0x8df   :  { %11299 = vmatprep.subr.bf16.mxu1 %v11804_v10 }
 0x993   :  { %v10747_v63 = vpop.f32.mrb[18].mxu1 }
 0x994   :  { %v7050_v4 = vmul.f32 %v10747_v63, %v12532_v7  ;;  %v6449_v15 = vpop.f32.mrb[19].mxu1 }
 0x995   :  { %v7049_v33 = vmul.f32 %v6449_v15, %v12519_v30 }
 0x997   :  { %v10750_v26 = vpop.f32.mrb[20].mxu1 }
 0x998   :  { %v7052_v24 = vmul.f32 %v10750_v26, %v12524_v34  ;;  %v10795_v29 = vpop.f32.mrb[22].mxu0  ;;  %v6461_v21 = vpop.f32.mrb[21].mxu1 }
 0x999   :  { %v7054_v42 = vadd.f32 %v10795_v29, %v7050_v4  ;;  %v7051_v50 = vmul.f32 %v12514_v13, %v6461_v21  ;;  %v7027_v54 = vpop.f32.mrb[23].mxu0 }
 0x99a   :  { %v7053_v55 = vadd.f32 %v7049_v33, %v7027_v54 }
 0x99b   :  { %vm7058_vm3 = vcmp.ge.f32.partialorder %v7054_v42, 0.0  ;;  %v7062_v41 = vmul.f32 0.01, %v7054_v42 }
 0x99c   :  { %vm7057_vm5 = vcmp.ge.f32.partialorder %v7053_v55, 0.0  ;;  %v7061_v58 = vmul.f32 0.01, %v7053_v55  ;;  %v10798_v27 = vpop.f32.mrb[24].mxu0 }
 0x99d   :  { %v7056_v45 = vadd.f32 %v10798_v27, %v7052_v24  ;;  %v7039_v7 = vpop.f32.mrb[25].mxu0  ;;  %v7066_v53 = vsel %vm7058_vm3, %v7054_v42, %v7062_v41 }
 0x99e   :  { %v7055_v5 = vadd.f32 %v7051_v50, %v7039_v7  ;;  %v7065_v30 = vsel %vm7057_vm5, %v7053_v55, %v7061_v58 }
 0x99f   :  { %vm7060_vm6 = vcmp.ge.f32.partialorder %v7056_v45, 0.0  ;;  %v7064_v46 = vmul.f32 0.01, %v7056_v45  ;;  %v7069_v34 = vpack.c.bf16 %v7066_v53, %v7065_v30 }
 0x9a0   :  { %vm7059_vm7 = vcmp.ge.f32.partialorder %v7055_v5, 0.0  ;;  %v7063_v11 = vmul.f32 0.01, %v7055_v5 }
 0x9a1   :  { %v7068_v59 = vsel %vm7060_vm6, %v7056_v45, %v7064_v46  ;;  %10815 = vmatprep.mubr.bf16.mxu1 %v7069_v34 }
 0x9a2   :  { %v7067_v13 = vsel %vm7059_vm7, %v7055_v5, %v7063_v11 }
 0x9a3   :  { %v7070_v12 = vpack.c.bf16 %v7068_v59, %v7067_v13 }
 0x9a5   :  { %10816 = vmatmul.mubr.bf16.vlgmr.msra.gmra.mrb[24].mxu1 %v7070_v12 }
 0x9a6   :  { %10893 = vmatprep.mubr.msk.f32.mxu1 %vm11805_vm0, %v13022_v48 }
 0xa78   :  { %v12761_v22 = vpop.f32.mrb[24].mxu1 }
 0xa79   :  { %13023 = vst [vmem:[#allocation19_spill] sm:$0xff] %v12761_v22  ;;  %v7191_v49 = vand.u32 4294901760, %v12761_v22  ;;  %v7671_v44 = vmul.f32 %v12761_v22, %v12761_v22  ;;  %v12766_v51 = vpop.f32.mrb[25].mxu1 }
 0xa7a   :  { %v7185_v47 = vand.u32 4294901760, %v12766_v51  ;;  %v7669_v1 = vmul.f32 %v12766_v51, %v12766_v51  ;;  %v12771_v8 = vpop.f32.mrb[26].mxu1 }
 0xa7b   :  { %v12774_v23 = vsub.f32 %v12761_v22, %v7191_v49  ;;  %v7680_v17 = vand.u32 4294901760, %v7671_v44  ;;  %v7194_v20 = vand.u32 4294901760, %v12771_v8  ;;  %v7672_v39 = vmul.f32 %v12771_v8, %v12771_v8  ;;  %v12779_v32 = vpop.f32.mrb[27].mxu1 }
 0xa7c   :  { %v12782_v43 = vsub.f32 %v12766_v51, %v7185_v47  ;;  %v7674_v60 = vand.u32 4294901760, %v7669_v1  ;;  %v7188_v63 = vand.u32 4294901760, %v12779_v32  ;;  %v7670_v4 = vmul.f32 %v12779_v32, %v12779_v32 }
 0xa7d   :  { %v7280_v15 = vand.u32 4294901760, %v12774_v23  ;;  %v12788_v33 = vsub.f32 %v7671_v44, %v7680_v17  ;;  %v12791_v26 = vsub.f32 %v12771_v8, %v7194_v20  ;;  %v7683_v24 = vand.u32 4294901760, %v7672_v39 }
 0xa7e   :  { %v7266_v29 = vand.u32 4294901760, %v12782_v43  ;;  %v12794_v21 = vsub.f32 %v7669_v1, %v7674_v60  ;;  %v12797_v42 = vsub.f32 %v12779_v32, %v7188_v63  ;;  %v7677_v50 = vand.u32 4294901760, %v7670_v4 }
 0xa7f   :  { %v7287_v54 = vand.u32 4294901760, %v12791_v26  ;;  %v12800_v55 = vsub.f32 %v7672_v39, %v7683_v24  ;;  %v12802_v41 = vpack.c.bf16 %v7188_v63, %v7185_v47  ;;  %v12804_v58 = vpack.c.bf16 %v7194_v20, %v7191_v49 }
 0xa80   :  { %v7273_v27 = vand.u32 4294901760, %v12797_v42  ;;  %v7761_v45 = vsub.f32 %v7670_v4, %v7677_v50  ;;  %v12807_v7 = vpack.c.bf16 %v7677_v50, %v7674_v60  ;;  %v12809_v53 = vpack.c.bf16 %v7683_v24, %v7680_v17 }
 0xa81   :  { %11265 = vmatpush3.bf16.msra.mxu0 %v12802_v41  ;;  %v7267_v5 = vsub.f32 %v12782_v43, %v7266_v29  ;;  %v7755_v30 = vand.u32 4294901760, %v12794_v21  ;;  %v7281_v46 = vsub.f32 %v12774_v23, %v7280_v15  ;;  %v7288_v34 = vsub.f32 %v12791_v26, %v7287_v54 }
 0xa82   :  { %11301 = vmatpush3.bf16.msra.mxu1 %v12807_v7  ;;  %11266 = vmatprep.subr.bf16.mxu0 %v11804_v10  ;;  %v7274_v11 = vsub.f32 %v12797_v42, %v7273_v27  ;;  %v7762_v59 = vand.u32 4294901760, %v7761_v45  ;;  %v7769_v13 = vand.u32 4294901760, %v12788_v33  ;;  %v7776_v12 = vand.u32 4294901760, %v12800_v55 }
 0xa83   :  { %11302 = vmatprep.subr.bf16.mxu1 %v11804_v10  ;;  %v7268_v49 = vand.u32 4294901760, %v7267_v5  ;;  %v7756_v44 = vsub.f32 %v12794_v21, %v7755_v30  ;;  %v7282_v47 = vand.u32 4294901760, %v7281_v46  ;;  %v7289_v1 = vand.u32 4294901760, %v7288_v34 }
 0xa84   :  { %v7275_v17 = vand.u32 4294901760, %v7274_v11  ;;  %v7763_v20 = vsub.f32 %v7761_v45, %v7762_v59  ;;  %v7770_v39 = vsub.f32 %v12788_v33, %v7769_v13  ;;  %v7777_v60 = vsub.f32 %v12800_v55, %v7776_v12 }
 0xa85   :  { %11268 = vmatpush3.bf16.msra.mxu0 %v12804_v58  ;;  %v7757_v63 = vand.u32 4294901760, %v7756_v44  ;;  %v11273_v4 = vpack.c.bf16 %v7289_v1, %v7282_v47  ;;  %v11276_v24 = vpack.c.bf16 %v12797_v42, %v12782_v43  ;;  %v11312_v50 = vpack.c.bf16 %v7761_v45, %v12794_v21 }
 0xa86   :  { %11304 = vmatpush3.bf16.msra.mxu1 %v12809_v53  ;;  %11269 = vmatprep.subr.bf16.mxu0 %v11804_v10  ;;  %v11270_v5 = vpack.c.bf16 %v7275_v17, %v7268_v49  ;;  %v7764_v46 = vand.u32 4294901760, %v7763_v20  ;;  %v7771_v34 = vand.u32 4294901760, %v7770_v39  ;;  %v7778_v11 = vand.u32 4294901760, %v7777_v60 }
 0xa87   :  { %11305 = vmatprep.subr.bf16.mxu1 %v11804_v10  ;;  %v11279_v22 = vpack.c.bf16 %v12791_v26, %v12774_v23  ;;  %v11315_v44 = vpack.c.bf16 %v12800_v55, %v12788_v33  ;;  %v11288_v47 = vpack.c.bf16 %v7273_v27, %v7266_v29  ;;  %v11324_v43 = vpack.c.bf16 %v7762_v59, %v7755_v30 }
 0xa88   :  { %10828 = vmatmul.mubr.f32.vlgmr.msra.gmra.mrb[26].mxu0 %v11968_v28  ;;  %v11306_v21 = vpack.c.bf16 %v7764_v46, %v7757_v63  ;;  %v11309_v42 = vpack.c.bf16 %v7778_v11, %v7771_v34  ;;  %v11291_v45 = vpack.c.bf16 %v7287_v54, %v7280_v15  ;;  %v11327_v1 = vpack.c.bf16 %v7776_v12, %v7769_v13 }
 0xa89   :  { %11271 = vmatpush3.bf16.msra.mxu0 %v11270_v5  ;;  %10894 = vmatmul.mubr.f32.vlgmr.msra.gmra.mrb[22].mxu1 %v11968_v28  ;;  %v8167_v29 = vsub.s32 3, %v11940_v14 }
 0xa8a   :  { %11307 = vmatpush3.bf16.msra.mxu1 %v11306_v21  ;;  %11272 = vmatprep.subr.bf16.mxu0 %v11804_v10 }
 0xa8b   :  { %11308 = vmatprep.subr.bf16.mxu1 %v11804_v10  ;;  %10838 = vmatprep.mubr.msk.f32.mxu0 %vm11805_vm0, %v13022_v48  ;;  %v8168_v54 = vrot.slane %v12656_v52, %v8167_v29 }
 0xa8c   :  { %10904 = vmatprep.mubr.msk.f32.mxu1 %vm11805_vm0, %v13022_v48 }
 0xa8d   :  { %11274 = vmatpush3.bf16.msra.mxu0 %v11273_v4 }
 0xa8e   :  { %11310 = vmatpush3.bf16.msra.mxu1 %v11309_v42  ;;  %11275 = vmatprep.subr.bf16.mxu0 %v11804_v10 }
 0xa8f   :  { %11311 = vmatprep.subr.bf16.mxu1 %v11804_v10 }
 0xa90   :  { %10839 = vmatmul.mubr.msk.f32.vlgmr.msra.gmra.mrb[26].mxu0 %vm317_vm2, %v11945_v16 }
 0xa91   :  { %11277 = vmatpush3.bf16.msra.mxu0 %v11276_v24  ;;  %10905 = vmatmul.mubr.msk.f32.vlgmr.msra.gmra.mrb[22].mxu1 %vm317_vm2, %v11945_v16 }
 0xa92   :  { %11313 = vmatpush3.bf16.msra.mxu1 %v11312_v50  ;;  %11278 = vmatprep.subr.bf16.mxu0 %v11804_v10 }
 0xa93   :  { %11314 = vmatprep.subr.bf16.mxu1 %v11804_v10  ;;  %10849 = vmatprep.mubr.msk.f32.mxu0 %vm11805_vm0, %v13022_v48 }
 0xa94   :  { %10915 = vmatprep.mubr.msk.f32.mxu1 %vm11805_vm0, %v13022_v48 }
 0xa95   :  { %11280 = vmatpush3.bf16.msra.mxu0 %v11279_v22 }
 0xa96   :  { %11316 = vmatpush3.bf16.msra.mxu1 %v11315_v44  ;;  %11281 = vmatprep.subr.bf16.mxu0 %v11804_v10 }
 0xa97   :  { %11317 = vmatprep.subr.bf16.mxu1 %v11804_v10 }
 0xa98   :  { %10850 = vmatmul.mubr.f32.vlgmr.msra.gmra.mrb[26].mxu0 %v11949_v18 }
 0xa99   :  { %11283 = vmatpush3.bf16.msra.mxu0 %v12802_v41  ;;  %10916 = vmatmul.mubr.f32.vlgmr.msra.gmra.mrb[22].mxu1 %v11949_v18 }
 0xa9a   :  { %11319 = vmatpush3.bf16.msra.mxu1 %v12807_v7  ;;  %11284 = vmatprep.subr.bf16.mxu0 %v11804_v10 }
 0xa9b   :  { %11320 = vmatprep.subr.bf16.mxu1 %v11804_v10  ;;  %10860 = vmatprep.mubr.msk.f32.mxu0 %vm11805_vm0, %v13022_v48 }
 0xa9c   :  { %10926 = vmatprep.mubr.msk.f32.mxu1 %vm11805_vm0, %v13022_v48 }
 0xa9d   :  { %11286 = vmatpush3.bf16.msra.mxu0 %v12804_v58 }
 0xa9e   :  { %11322 = vmatpush3.bf16.msra.mxu1 %v12809_v53  ;;  %11287 = vmatprep.subr.bf16.mxu0 %v11804_v10 }
 0xa9f   :  { %11323 = vmatprep.subr.bf16.mxu1 %v11804_v10 }
 0xaa0   :  { %10861 = vmatmul.mubr.f32.vlgmr.msra.gmra.mrb[26].mxu0 %v11952_v19 }
 0xaa1   :  { %11289 = vmatpush3.bf16.msra.mxu0 %v11288_v47  ;;  %10927 = vmatmul.mubr.f32.vlgmr.msra.gmra.mrb[22].mxu1 %v11952_v19 }
 0xaa2   :  { %11325 = vmatpush3.bf16.msra.mxu1 %v11324_v43  ;;  %11290 = vmatprep.subr.bf16.mxu0 %v11804_v10 }
 0xaa3   :  { %11326 = vmatprep.subr.bf16.mxu1 %v11804_v10  ;;  %10871 = vmatprep.mubr.msk.f32.mxu0 %vm11805_vm0, %v13022_v48 }
 0xaa4   :  { %10937 = vmatprep.mubr.msk.f32.mxu1 %vm11805_vm0, %v13022_v48 }
 0xaa5   :  { %11292 = vmatpush3.bf16.msra.mxu0 %v11291_v45 }
 0xaa6   :  { %11328 = vmatpush3.bf16.msra.mxu1 %v11327_v1  ;;  %11293 = vmatprep.subr.bf16.mxu0 %v11804_v10 }
 0xaa7   :  { %11329 = vmatprep.subr.bf16.mxu1 %v11804_v10 }
 0xaa8   :  { %10872 = vmatmul.mubr.msk.f32.vlgmr.msra.gmra.mrb[26].mxu0 %vm317_vm2, %v11945_v16 }
 0xaa9   :  { %11295 = vmatpush3.bf16.msra.mxu0 %v12802_v41  ;;  %10938 = vmatmul.mubr.msk.f32.vlgmr.msra.gmra.mrb[22].mxu1 %vm317_vm2, %v11945_v16 }
 0xaaa   :  { %11331 = vmatpush3.bf16.msra.mxu1 %v12807_v7  ;;  %11296 = vmatprep.subr.bf16.mxu0 %v11804_v10 }
 0xaab   :  { %11332 = vmatprep.subr.bf16.mxu1 %v11804_v10  ;;  %10882 = vmatprep.mubr.msk.f32.mxu0 %vm11805_vm0, %v13022_v48 }
 0xaac   :  { %10948 = vmatprep.mubr.msk.f32.mxu1 %vm11805_vm0, %v13022_v48 }
 0xaad   :  { %11298 = vmatpush3.bf16.msra.mxu0 %v12804_v58 }
 0xaae   :  { %11334 = vmatpush3.bf16.msra.mxu1 %v12809_v53 }
 0xab0   :  { %10883 = vmatmul.mubr.msk.f32.vlgmr.msra.gmra.mrb[26].mxu0 %vm317_vm2, %v11945_v16 }
 0xab1   :  { %10949 = vmatmul.mubr.msk.f32.vlgmr.msra.gmra.mrb[22].mxu1 %vm317_vm2, %v11945_v16  ;;  %10953 = vmatprep.mubr.f32.mxu0 %v12111_v40  ;;  %v8173_v16 = vsub.s32 7, %v11940_v14 }
 0xab2   :  { %11001 = vmatprep.mubr.f32.mxu1 %v12111_v40 }
 0xab3   :  { %v8174_v40 = vrot.slane %v12656_v52, %v8173_v16 }
 0xb83   :  { %v7665_v10 = vpop.f32.mrb[26].mxu0 }
 0xb84   :  { %v8158_v18 = vmul.f32 0.125, %v7665_v10  ;;  %v10884_v19 = vpop.f32.mrb[27].mxu0  ;;  %v8154_v28 = vpop.f32.mrb[22].mxu1 }
 0xb85   :  { %v8159_v22 = vmul.f32 0.125, %v8154_v28  ;;  %v10950_v48 = vpop.f32.mrb[23].mxu1 }
 0xb86   :  { %v8160_v23 = vmul.f32 %v8158_v18, %v8158_v18 }
 0xb88   :  { %v8161_v15 = vsub.f32 %v8159_v22, %v8160_v23 }
 0xb8a   :  { %v8162_v33 = vmax.f32 %v8161_v15, 0.0 }
 0xb8c   :  { %v8163_v26 = vadd.f32 1e-05, %v8162_v33 }
 0xb8e   :  { %11629 = vrsqrt.f32 %v8163_v26 }
 0xb98   :  { %v11630_v55 = vpop.eup %11629 }
 0xb99   :  { %v8169_v41 = vmul.f32 %v11630_v55, %v8168_v54 }
 0xb9b   :  { %v8170_v58 = vmul.f32 %v8169_v41, %v8158_v18  ;;  %v8177_v27 = vsel %vm1326_vm8, %v8169_v41, 0 }
 0xb9c   :  { %v12907_v7 = vand.u32 4294901760, %v8177_v27 }
 0xb9d   :  { %v8175_v53 = vsub.f32 %v8174_v40, %v8170_v58 }
 0xb9e   :  { %10951 = vmatprep.subr.mxu0 %v12907_v7  ;;  %v8287_v30 = vsub.f32 %v8177_v27, %v12907_v7 }
 0xb9f   :  { %v8755_v59 = vsel %vm1326_vm8, %v8175_v53, 0  ;;  %10952 = vmatpush3.msra.mxu0 %v12907_v7 }
 0xba0   :  { %v12913_v13 = vand.u32 4294901760, %v8755_v59  ;;  %10954 = vmatmul.mubr.f32.vlgmr.msra.gmra.mrb[28].mxu0 %v12164_v25  ;;  %v8288_v14 = vand.u32 4294901760, %v8287_v30 }
 0xba1   :  { %10956 = vmatprep.mubr.f32.mxu0 %v12168_v31 }
 0xba2   :  { %10999 = vmatprep.subr.mxu1 %v12913_v13  ;;  %v8289_v52 = vsub.f32 %v8287_v30, %v8288_v14  ;;  %v8865_v12 = vsub.f32 %v8755_v59, %v12913_v13 }
 0xba3   :  { %11000 = vmatpush3.msra.mxu1 %v12913_v13 }
 0xba4   :  { %10957 = vmatmul.mubr.f32.gmra.mrb[30].mxu0 %v12177_v36  ;;  %11002 = vmatmul.mubr.f32.vlgmr.msra.gmra.mrb[28].mxu1 %v12164_v25  ;;  %v8290_v49 = vand.u32 4294901760, %v8289_v52  ;;  %v8866_v17 = vand.u32 4294901760, %v8865_v12  ;;  %v13024_v25 = vld [vmem:[#allocation19_spill] sm:$0xff] }
 0xba5   :  { %10961 = vmatprep.mubr.msk.f32.mxu0 %vm1313_vm4, %v12100_v35  ;;  %11004 = vmatprep.mubr.f32.mxu1 %v12168_v31 }
 0xba6   :  { %10959 = vmatprep.subr.mxu0 %v8290_v49  ;;  %v8867_v20 = vsub.f32 %v8865_v12, %v8866_v17 }
 0xba7   :  { %10960 = vmatpush3.msra.mxu0 %v8290_v49 }
 0xba8   :  { %10962 = vmatmul.mubr.msk.f32.vlgmr.msra.gmra.mrb[28].mxu0 %vm1313_vm4, %v12121_v56  ;;  %10967 = vmatprep.subr.mxu0 %v8287_v30  ;;  %v8868_v39 = vand.u32 4294901760, %v8867_v20 }
 0xba9   :  { %11005 = vmatmul.mubr.f32.gmra.mrb[30].mxu1 %v12177_v36  ;;  %10968 = vmatpush3.msra.mxu0 %v8287_v30 }
 0xbaa   :  { %10975 = vmatprep.subr.mxu0 %v12907_v7  ;;  %11007 = vmatprep.subr.mxu1 %v8868_v39 }
 0xbab   :  { %10964 = vmatprep.mubr.msk.f32.mxu0 %vm1313_vm4, %v12124_v57  ;;  %11008 = vmatpush3.msra.mxu1 %v8868_v39 }
 0xbac   :  { %11009 = vmatprep.mubr.msk.f32.mxu1 %vm1313_vm4, %v12100_v35  ;;  %10965 = vmatmul.mubr.msk.f32.gmra.mrb[30].mxu0 %vm1313_vm4, %v12132_v61 }
 0xbad   :  { %11010 = vmatmul.mubr.msk.f32.vlgmr.msra.gmra.mrb[28].mxu1 %vm1313_vm4, %v12121_v56  ;;  %11015 = vmatprep.subr.mxu1 %v8865_v12 }
 0xbae   :  { %11016 = vmatpush3.msra.mxu1 %v8865_v12  ;;  %10969 = vmatprep.mubr.f32.mxu0 %v12104_v37 }
 0xbaf   :  { %11023 = vmatprep.subr.mxu1 %v12913_v13  ;;  %11012 = vmatprep.mubr.msk.f32.mxu1 %vm1313_vm4, %v12124_v57 }
 0xbb0   :  { %10970 = vmatmul.mubr.f32.vlgmr.msra.gmra.mrb[28].mxu0 %v12134_v62 }
 0xbb1   :  { %10976 = vmatpush3.msra.mxu0 %v12907_v7  ;;  %11013 = vmatmul.mubr.msk.f32.gmra.mrb[30].mxu1 %vm1313_vm4, %v12132_v61 }
 0xbb2   :  { %10983 = vmatprep.subr.mxu0 %v8288_v14  ;;  %10972 = vmatprep.mubr.f32.mxu0 %v12137_v0 }
 0xbb3   :  { %11017 = vmatprep.mubr.f32.mxu1 %v12104_v37 }
 0xbb4   :  { %10973 = vmatmul.mubr.f32.gmra.mrb[30].mxu0 %v12146_v3 }
 0xbb5   :  { %11018 = vmatmul.mubr.f32.vlgmr.msra.gmra.mrb[28].mxu1 %v12134_v62  ;;  %10977 = vmatprep.mubr.f32.mxu0 %v12107_v38 }
 0xbb6   :  { %11024 = vmatpush3.msra.mxu1 %v12913_v13  ;;  %11020 = vmatprep.mubr.f32.mxu1 %v12137_v0 }
 0xbb7   :  { %11031 = vmatprep.subr.mxu1 %v8866_v17 }
 0xbb8   :  { %10978 = vmatmul.mubr.f32.vlgmr.msra.gmra.mrb[28].mxu0 %v12144_v2 }
 0xbb9   :  { %10984 = vmatpush3.msra.mxu0 %v8288_v14  ;;  %11021 = vmatmul.mubr.f32.gmra.mrb[30].mxu1 %v12146_v3 }
 0xbba   :  { %10991 = vmatprep.subr.mxu0 %v12907_v7  ;;  %10980 = vmatprep.mubr.f32.mxu0 %v12151_v6 }
 0xbbb   :  { %11025 = vmatprep.mubr.f32.mxu1 %v12107_v38 }
 0xbbc   :  { %10981 = vmatmul.mubr.f32.gmra.mrb[30].mxu0 %v12156_v9 }
 0xbbd   :  { %11026 = vmatmul.mubr.f32.vlgmr.msra.gmra.mrb[28].mxu1 %v12144_v2  ;;  %10985 = vmatprep.mubr.msk.f32.mxu0 %vm1313_vm4, %v12100_v35 }
 0xbbe   :  { %11032 = vmatpush3.msra.mxu1 %v8866_v17  ;;  %11028 = vmatprep.mubr.f32.mxu1 %v12151_v6 }
 0xbbf   :  { %11039 = vmatprep.subr.mxu1 %v12913_v13 }
 0xbc0   :  { %10986 = vmatmul.mubr.msk.f32.vlgmr.msra.gmra.mrb[28].mxu0 %vm1313_vm4, %v12121_v56 }
 0xbc1   :  { %10992 = vmatpush3.msra.mxu0 %v12907_v7  ;;  %11029 = vmatmul.mubr.f32.gmra.mrb[30].mxu1 %v12156_v9 }
 0xbc2   :  { %10988 = vmatprep.mubr.msk.f32.mxu0 %vm1313_vm4, %v12124_v57  ;;  %11033 = vmatprep.mubr.msk.f32.mxu1 %vm1313_vm4, %v12100_v35 }
 0xbc4   :  { %10989 = vmatmul.mubr.msk.f32.gmra.mrb[30].mxu0 %vm1313_vm4, %v12132_v61 }
 0xbc5   :  { %11034 = vmatmul.mubr.msk.f32.vlgmr.msra.gmra.mrb[28].mxu1 %vm1313_vm4, %v12121_v56  ;;  %10993 = vmatprep.mubr.msk.f32.mxu0 %vm1313_vm4, %v12100_v35 }
 0xbc6   :  { %11040 = vmatpush3.msra.mxu1 %v12913_v13  ;;  %11036 = vmatprep.mubr.msk.f32.mxu1 %vm1313_vm4, %v12124_v57 }
 0xbc8   :  { %10994 = vmatmul.mubr.msk.f32.vlgmr.msra.gmra.mrb[28].mxu0 %vm1313_vm4, %v12121_v56 }
 0xbc9   :  { %11037 = vmatmul.mubr.msk.f32.gmra.mrb[30].mxu1 %vm1313_vm4, %v12132_v61  ;;  %10996 = vmatprep.mubr.msk.f32.mxu0 %vm1313_vm4, %v12124_v57 }
 0xbca   :  { %11041 = vmatprep.mubr.msk.f32.mxu1 %vm1313_vm4, %v12100_v35 }
 0xbcc   :  { %10997 = vmatmul.mubr.msk.f32.gmra.mrb[30].mxu0 %vm1313_vm4, %v12132_v61 }
 0xbcd   :  { %11042 = vmatmul.mubr.msk.f32.vlgmr.msra.gmra.mrb[28].mxu1 %vm1313_vm4, %v12121_v56 }
 0xbce   :  { %11044 = vmatprep.mubr.msk.f32.mxu1 %vm1313_vm4, %v12124_v57 }
 0xbd1   :  { %11045 = vmatmul.mubr.msk.f32.gmra.mrb[30].mxu1 %vm1313_vm4, %v12132_v61 }
 0xc9b   :  { %v10995_v37 = vpop.f32.mrb[28].mxu0 }
 0xc9c   :  { %v9333_v38 = vmul.f32 %v10995_v37, %v12779_v32  ;;  %v8732_v62 = vpop.f32.mrb[29].mxu0 }
 0xc9d   :  { %v9332_v0 = vmul.f32 %v8732_v62, %v12766_v51 }
 0xc9f   :  { %v10998_v2 = vpop.f32.mrb[30].mxu0 }
 0xca0   :  { %v9335_v35 = vmul.f32 %v10998_v2, %v12771_v8  ;;  %v11043_v3 = vpop.f32.mrb[28].mxu1  ;;  %v8744_v6 = vpop.f32.mrb[31].mxu0 }
 0xca1   :  { %v9337_v9 = vadd.f32 %v11043_v3, %v9333_v38  ;;  %v9334_v56 = vmul.f32 %v13024_v25, %v8744_v6  ;;  %v9310_v31 = vpop.f32.mrb[29].mxu1 }
 0xca2   :  { %v9336_v36 = vadd.f32 %v9332_v0, %v9310_v31 }
 0xca3   :  { %vm9341_vm0 = vcmp.ge.f32.partialorder %v9337_v9, 0.0  ;;  %v9345_v57 = vmul.f32 0.01, %v9337_v9 }
 0xca4   :  { %vm9340_vm2 = vcmp.ge.f32.partialorder %v9336_v36, 0.0  ;;  %v9344_v61 = vmul.f32 0.01, %v9336_v36  ;;  %v11046_v60 = vpop.f32.mrb[30].mxu1 }
 0xca5   :  { %v9349_v63 = vsel %vm9341_vm0, %v9337_v9, %v9345_v57  ;;  %v9339_v32 = vadd.f32 %v11046_v60, %v9335_v35  ;;  %v9322_v4 = vpop.f32.mrb[31].mxu1 }
 0xca6   :  { %9353 = vst [vmem:[#allocation13 + $0x8] sm:$0xff] %v9349_v63  ;;  %v9348_v51 = vsel %vm9340_vm2, %v9336_v36, %v9344_v61  ;;  %v9338_v24 = vadd.f32 %v9334_v56, %v9322_v4 }
 0xca7   :  { %9352 = vst [vmem:[#allocation13] sm:$0xff] %v9348_v51  ;;  %vm9343_vm4 = vcmp.ge.f32.partialorder %v9339_v32, 0.0  ;;  %v9347_v8 = vmul.f32 0.01, %v9339_v32 }
 0xca8   :  { %vm9342_vm8 = vcmp.ge.f32.partialorder %v9338_v24, 0.0  ;;  %v9346_v50 = vmul.f32 0.01, %v9338_v24 }
 0xca9   :  { %v9351_v5 = vsel %vm9343_vm4, %v9339_v32, %v9347_v8 }
 0xcaa   :  { %9355 = vst [vmem:[#allocation13 + $0x18] sm:$0xff] %v9351_v5  ;;  %v9350_v46 = vsel %vm9342_vm8, %v9338_v24, %v9346_v50 }
 0xcab   :  { %9354 = vst [vmem:[#allocation13 + $0x10] sm:$0xff] %v9350_v46 }
 0xcac   :  { %11775 = shalt.err (!%p11772_p10)
}
 0xcad   :  { %s11776_s0 = scalar_lea.hbm %s13018_s6, 512 }
 0xcae   :  { %p11777_p11 = scmp.ne.s32.totalorder %s13018_s6, %s11776_s0  ;;  %p11780_p12 = scmp.lt.u32.totalorder %s11776_s0, %s13018_s6 }
 0xcb0   :  { %p11782_p13 = pnand %p11780_p12, %p11777_p11 }
 0xcb2   :  { %11785 = shalt.err (!%p11782_p13)
}
 0xcb3   :  { %s11808_s25 = smov 128   ;;  %s11809_s26 = smov 8  }
 0xcb4   :  { %9367 = dma.vmem_to_hbm [thread:$0]  %s9362_s20, 512, %s13018_s6, [#allocation4], %s11808_s25, %s11808_s25, %s11809_s26  }
 0xcb5   :  { %11794 = dma.done.wait [#allocation4], 512  }
 0xcb6   :  { %11795 = vsyncadd [#allocation4], 4294966784 }
 0xcb7   :  { %9371 = vsyncpa [#allocation3], 1 }
 0xcb8   :  { %9372 = vsyncpa [#allocation6], 1 }
 0xcb9   :  { %9373 = vsyncpa [#allocation9], 1 }
 0xcba   :  { %9374 = vsyncpa [#allocation12], 1 }
 0xcbb   :  { %9375 = vsyncpa [#allocation4], 1 }

</bundles_post_ra>
